<compile_context>
chip_gen: v7x
topology: tpu7x:2x2x1
jax: 0.10.0
libtpu: 0.0.40
codegen_flags: <defaults>
</compile_context>

<pallas_src>
import functools
import math

import jax
import jax.numpy as jnp
from jax.experimental import pallas as pl
from jax.experimental.pallas import tpu as pltpu

EPS = 1e-6


def _layer_norm_ref(x, a, b):
    """PyTorch-style LayerNorm of the module (pure JAX, used by the reference)."""
    mean = jnp.mean(x, axis=-1, keepdims=True)
    var = jnp.sum((x - mean) ** 2, axis=-1, keepdims=True) / (x.shape[-1] - 1)
    std = jnp.sqrt(var)
    return a * (x - mean) / (EPS + std) + b


def _layer_norm_kernel(x, a, b):
    """Same math, division replaced by an EUP reciprocal (kernel-side only)."""
    mean = jnp.mean(x, axis=-1, keepdims=True)
    var = jnp.sum((x - mean) ** 2, axis=-1, keepdims=True) / (x.shape[-1] - 1)
    std = jnp.sqrt(var)
    inv = pl.reciprocal(EPS + std, approx=False)
    return a * (x - mean) * inv + b


def encoder_layer_kernel(
    x_ref, keep_ref, fill_ref,
    ln1_a_ref, ln1_b_ref,
    wqkv_ref, bqkv_ref, wo_ref, bo_ref,
    ln2_a_ref, ln2_b_ref,
    w1_ref, b1_ref, w2_ref, b2_ref,
    fn_a_ref, fn_b_ref,
    out_ref,
    x_vmem,
    *, num_heads,
):
    """One grid step == one encoder layer applied to one batch block.

    grid = (batch_blocks, num_layers); the layer axis is innermost ("arbitrary")
    and the running activation is carried across it in VMEM scratch `x_vmem`.
    """
    l = pl.program_id(1)

    # Load the input block only at the first layer of each batch block.
    @pl.when(l == 0)
    def _():
        x_vmem[...] = x_ref[...]

    x = x_vmem[...]                          # (Bt, S, D) f32
    Bt, S, D = x.shape
    dk = D // num_heads
    scale = jnp.float32(1.0 / math.sqrt(dk))
    keep = keep_ref[...]                     # (Bt, S, S): 1.0 attend / 0.0 masked
    fill = fill_ref[...]                     # (Bt, S, S): 0.0 attend / -1e9 masked

    # ---------------- self-attention sublayer (pre-norm residual) ----------------
    xn = _layer_norm_kernel(x, ln1_a_ref[...], ln1_b_ref[...])
    xf = xn.reshape(Bt * S, D)
    # Fused Q/K/V: one (Bt*S, D) x (D, 3D) MXU matmul instead of three.
    qkv = jnp.dot(xf, wqkv_ref[...], preferred_element_type=jnp.float32) + bqkv_ref[...]
    q = qkv[:, 0 * D:1 * D].reshape(Bt, S, D)
    k = qkv[:, 1 * D:2 * D].reshape(Bt, S, D)
    v = qkv[:, 2 * D:3 * D].reshape(Bt, S, D)

    heads = []
    for h in range(num_heads):
        sl = slice(h * dk, (h + 1) * dk)
        qh = q[:, :, sl]
        kh = k[:, :, sl]
        vh = v[:, :, sl]
        s = jnp.einsum('bqd,bkd->bqk', qh, kh,
                       preferred_element_type=jnp.float32) * scale
        # Exact masked_fill(mask == 0, -1e9); the compare was hoisted to the wrapper.
        s = s * keep + fill
        s = s - jnp.max(s, axis=-1, keepdims=True)
        p = jnp.exp(s)
        p = p * pl.reciprocal(jnp.sum(p, axis=-1, keepdims=True), approx=False)
        heads.append(jnp.einsum('bqk,bkd->bqd', p, vh,
                                preferred_element_type=jnp.float32))

    # Merge heads, then a single full-contraction (K = D) output projection.
    attn = jnp.concatenate(heads, axis=-1).reshape(Bt * S, D)
    attn = jnp.dot(attn, wo_ref[...], preferred_element_type=jnp.float32) + bo_ref[...]
    x = x + attn.reshape(Bt, S, D)           # dropout == identity (eval mode)

    # ---------------- position-wise feed-forward sublayer ----------------
    xn = _layer_norm_kernel(x, ln2_a_ref[...], ln2_b_ref[...])
    h1 = jnp.dot(xn.reshape(Bt * S, D), w1_ref[...],
                 preferred_element_type=jnp.float32) + b1_ref[...]
    h1 = jnp.maximum(h1, 0.0)                # ReLU
    ff = jnp.dot(h1, w2_ref[...], preferred_element_type=jnp.float32) + b2_ref[...]
    x = x + ff.reshape(Bt, S, D)             # dropout == identity

    x_vmem[...] = x

    # Final Encoder LayerNorm: written once per batch block, on the last layer.
    @pl.when(l == pl.num_programs(1) - 1)
    def _():
        out_ref[...] = _layer_norm_kernel(x, fn_a_ref[...], fn_b_ref[...])


def init_params(key, num_layers, d_model, d_ff):
    """Deterministic synthetic parameters. Linear weights stored as (in, out)."""
    def nrm(k, shape, scale=0.02):
        return (scale * jax.random.normal(k, shape)).astype(jnp.float32)

    ks = jax.random.split(key, 8)
    return {
        'ln1_a': jnp.ones((num_layers, 1, d_model), jnp.float32),
        'ln1_b': jnp.zeros((num_layers, 1, d_model), jnp.float32),
        'wq': nrm(ks[0], (num_layers, d_model, d_model)),
        'bq': nrm(ks[1], (num_layers, 1, d_model)),
        'wk': nrm(ks[2], (num_layers, d_model, d_model)),
        'bk': nrm(ks[3], (num_layers, 1, d_model)),
        'wv': nrm(ks[4], (num_layers, d_model, d_model)),
        'bv': nrm(ks[5], (num_layers, 1, d_model)),
        'wo': nrm(ks[6], (num_layers, d_model, d_model)),
        'bo': jnp.zeros((num_layers, 1, d_model), jnp.float32),
        'ln2_a': jnp.ones((num_layers, 1, d_model), jnp.float32),
        'ln2_b': jnp.zeros((num_layers, 1, d_model), jnp.float32),
        'w1': nrm(ks[7], (num_layers, d_model, d_ff)),
        'b1': jnp.zeros((num_layers, 1, d_ff), jnp.float32),
        'w2': nrm(jax.random.fold_in(key, 99), (num_layers, d_ff, d_model)),
        'b2': jnp.zeros((num_layers, 1, d_model), jnp.float32),
        'fn_a': jnp.ones((1, d_model), jnp.float32),
        'fn_b': jnp.zeros((1, d_model), jnp.float32),
    }


@functools.partial(jax.jit, static_argnames=('num_layers', 'num_heads', 'batch_block'))
def encoder_forward(x, mask, params, *, num_layers, num_heads, batch_block=1):
    B, S, D = x.shape
    d_ff = params['w1'].shape[-1]
    assert D % num_heads == 0
    assert B % batch_block == 0

    # Hoisted mask handling: exact masked_fill(mask==0, -1e9) == scores*keep + fill.
    keep = (mask != 0.0).astype(jnp.float32)
    fill = jnp.where(mask == 0.0, jnp.float32(-1e9), jnp.float32(0.0))

    # Fused Q/K/V weights: one (D, 3D) matmul per layer instead of three (D, D).
    wqkv = jnp.concatenate([params['wq'], params['wk'], params['wv']], axis=-1)  # (L, D, 3D)
    bqkv = jnp.concatenate([params['bq'], params['bk'], params['bv']], axis=-1)  # (L, 1, 3D)

    Bt = batch_block
    grid = (B // Bt, num_layers)

    def batch_blk(shape):
        return pl.BlockSpec(shape, lambda b, l: (b, 0, 0))

    def layer_blk(shape):
        return pl.BlockSpec(shape, lambda b, l: (l, 0, 0))

    in_specs = [
        batch_blk((Bt, S, D)),                         # x
        batch_blk((Bt, S, S)),                         # keep
        batch_blk((Bt, S, S)),                         # fill
        layer_blk((None, 1, D)),                       # ln1_a
        layer_blk((None, 1, D)),                       # ln1_b
        layer_blk((None, D, 3 * D)),                   # wqkv
        layer_blk((None, 1, 3 * D)),                   # bqkv
        layer_blk((None, D, D)),                       # wo
        layer_blk((None, 1, D)),                       # bo
        layer_blk((None, 1, D)),                       # ln2_a
        layer_blk((None, 1, D)),                       # ln2_b
        layer_blk((None, D, d_ff)),                    # w1
        layer_blk((None, 1, d_ff)),                    # b1
        layer_blk((None, d_ff, D)),                    # w2
        layer_blk((None, 1, D)),                       # b2
        pl.BlockSpec((1, D), lambda b, l: (0, 0)),     # fn_a
        pl.BlockSpec((1, D), lambda b, l: (0, 0)),     # fn_b
    ]
    out_spec = pl.BlockSpec((Bt, S, D), lambda b, l: (b, 0, 0))

    return pl.pallas_call(
        functools.partial(encoder_layer_kernel, num_heads=num_heads),
        out_shape=jax.ShapeDtypeStruct((B, S, D), jnp.float32),
        grid_spec=pltpu.PrefetchScalarGridSpec(
            num_scalar_prefetch=0,
            grid=grid,
            in_specs=in_specs,
            out_specs=out_spec,
            scratch_shapes=[pltpu.VMEM((Bt, S, D), jnp.float32)],
        ),
        compiler_params=pltpu.CompilerParams(
            dimension_semantics=("parallel", "arbitrary"),
            vmem_limit_bytes=48 * 1024 * 1024,
        ),
    )(x, keep, fill,
      params['ln1_a'], params['ln1_b'], wqkv, bqkv,
      params['wo'], params['bo'], params['ln2_a'], params['ln2_b'],
      params['w1'], params['b1'], params['w2'], params['b2'],
      params['fn_a'], params['fn_b'])


def encoder_reference(x, mask, params, *, num_layers, num_heads):
    """Pure-JAX reference (matches the PyTorch module's math)."""
    B, S, D = x.shape
    dk = D // num_heads
    scale = 1.0 / math.sqrt(dk)
    for l in range(num_layers):
        xn = _layer_norm_ref(x, params['ln1_a'][l], params['ln1_b'][l])
        q = xn @ params['wq'][l] + params['bq'][l]
        k = xn @ params['wk'][l] + params['bk'][l]
        v = xn @ params['wv'][l] + params['bv'][l]
        qh = q.reshape(B, S, num_heads, dk).transpose(0, 2, 1, 3)
        kh = k.reshape(B, S, num_heads, dk).transpose(0, 2, 1, 3)
        vh = v.reshape(B, S, num_heads, dk).transpose(0, 2, 1, 3)
        scores = jnp.einsum('bhqd,bhkd->bhqk', qh, kh) * scale
        scores = jnp.where(mask[:, None, :, :] == 0.0, -1e9, scores)
        p = jax.nn.softmax(scores, axis=-1)
        o = jnp.einsum('bhqk,bhkd->bhqd', p, vh).transpose(0, 2, 1, 3).reshape(B, S, D)
        x = x + (o @ params['wo'][l] + params['bo'][l])
        xn = _layer_norm_ref(x, params['ln2_a'][l], params['ln2_b'][l])
        h1 = jnp.maximum(xn @ params['w1'][l] + params['b1'][l], 0.0)
        x = x + (h1 @ params['w2'][l] + params['b2'][l])
    return _layer_norm_ref(x, params['fn_a'], params['fn_b'])


if __name__ == "__main__":
    # Small shapes consistent with the module (d_model scaled down from 512).
    B, S, D = 2, 8, 32
    NUM_HEADS = 4
    D_FF = 64
    NUM_LAYERS = 2

    key = jax.random.PRNGKey(0)
    kx, kp = jax.random.split(key)
    x = jax.random.normal(kx, (B, S, D), dtype=jnp.float32)
    # mask of shape (B, S, S); nonzero => attend, zero => masked with -1e9
    mask = jnp.ones((B, S, S), dtype=jnp.float32)

    params = init_params(kp, NUM_LAYERS, D, D_FF)

    out = encoder_forward(x, mask, params, num_layers=NUM_LAYERS,
                          num_heads=NUM_HEADS, batch_block=1)
    out = jax.block_until_ready(out)

    ref = encoder_reference(x, mask, params, num_layers=NUM_LAYERS, num_heads=NUM_HEADS)
    assert out.shape == (B, S, D)
    assert jnp.allclose(out, ref, atol=1e-4, rtol=1e-4), "mismatch vs JAX reference"

    print("KERNEL_OK")
</pallas_src>

<mosaic_0001>
module attributes {stable_mosaic.version = 11 : i64} {
  func.func @encoder_layer_kernel(%arg0: i32, %arg1: i32, %arg2: memref<1x8x32xf32, #tpu.memory_space<vmem>>, %arg3: memref<1x8x8xf32, #tpu.memory_space<vmem>>, %arg4: memref<1x8x8xf32, #tpu.memory_space<vmem>>, %arg5: memref<1x1x32xf32, #tpu.memory_space<vmem>>, %arg6: memref<1x1x32xf32, #tpu.memory_space<vmem>>, %arg7: memref<1x32x96xf32, #tpu.memory_space<vmem>>, %arg8: memref<1x1x96xf32, #tpu.memory_space<vmem>>, %arg9: memref<1x32x32xf32, #tpu.memory_space<vmem>>, %arg10: memref<1x1x32xf32, #tpu.memory_space<vmem>>, %arg11: memref<1x1x32xf32, #tpu.memory_space<vmem>>, %arg12: memref<1x1x32xf32, #tpu.memory_space<vmem>>, %arg13: memref<1x32x64xf32, #tpu.memory_space<vmem>>, %arg14: memref<1x1x64xf32, #tpu.memory_space<vmem>>, %arg15: memref<1x64x32xf32, #tpu.memory_space<vmem>>, %arg16: memref<1x1x32xf32, #tpu.memory_space<vmem>>, %arg17: memref<1x32xf32, #tpu.memory_space<vmem>>, %arg18: memref<1x32xf32, #tpu.memory_space<vmem>>, %arg19: memref<1x8x32xf32, #tpu.memory_space<vmem>>, %arg20: memref<1x8x32xf32, #tpu.memory_space<vmem>>) attributes {dimension_semantics = [#tpu.dimension_semantics<parallel>, #tpu.dimension_semantics<arbitrary>], iteration_bounds = array<i64: 2, 2>, scalar_prefetch = 0 : i64, scratch_operands = 1 : i64, tpu.core_type = #tpu.core_type<tc>, window_params = [{transform_indices = @transform_0, window_bounds = array<i64: 1, 8, 32>}, {transform_indices = @transform_1, window_bounds = array<i64: 1, 8, 8>}, {transform_indices = @transform_2, window_bounds = array<i64: 1, 8, 8>}, {transform_indices = @transform_3, window_bounds = array<i64: 1, 1, 32>}, {transform_indices = @transform_4, window_bounds = array<i64: 1, 1, 32>}, {transform_indices = @transform_5, window_bounds = array<i64: 1, 32, 96>}, {transform_indices = @transform_6, window_bounds = array<i64: 1, 1, 96>}, {transform_indices = @transform_7, window_bounds = array<i64: 1, 32, 32>}, {transform_indices = @transform_8, window_bounds = array<i64: 1, 1, 32>}, {transform_indices = @transform_9, window_bounds = array<i64: 1, 1, 32>}, {transform_indices = @transform_10, window_bounds = array<i64: 1, 1, 32>}, {transform_indices = @transform_11, window_bounds = array<i64: 1, 32, 64>}, {transform_indices = @transform_12, window_bounds = array<i64: 1, 1, 64>}, {transform_indices = @transform_13, window_bounds = array<i64: 1, 64, 32>}, {transform_indices = @transform_14, window_bounds = array<i64: 1, 1, 32>}, {pipeline_mode = #tpu.pipeline_mode<synchronous>, transform_indices = @transform_15, window_bounds = array<i64: 1, 32>}, {pipeline_mode = #tpu.pipeline_mode<synchronous>, transform_indices = @transform_16, window_bounds = array<i64: 1, 32>}, {transform_indices = @transform_17, window_bounds = array<i64: 1, 8, 32>}]} {
    %c0_i32 = arith.constant 0 : i32
    %0 = arith.cmpi eq, %arg1, %c0_i32 : i32
    %1 = arith.extui %0 : i1 to i32
    %c0_i32_0 = arith.constant 0 : i32
    %2 = arith.cmpi ne, %1, %c0_i32_0 : i32
    scf.if %2 {
      %c0_83 = arith.constant 0 : index
      %c0_84 = arith.constant 0 : index
      %c0_85 = arith.constant 0 : index
      %188 = vector.load %arg2[%c0_83, %c0_84, %c0_85] : memref<1x8x32xf32, #tpu.memory_space<vmem>>, vector<1x8x32xf32>
      %c0_86 = arith.constant 0 : index
      %c0_87 = arith.constant 0 : index
      %c0_88 = arith.constant 0 : index
      %189 = vector.load %arg20[%c0_86, %c0_87, %c0_88] : memref<1x8x32xf32, #tpu.memory_space<vmem>>, vector<1x8x32xf32>
      tpu.vector_store %arg20[%c0_86, %c0_87, %c0_88], %188 {strides = array<i32>} : memref<1x8x32xf32, #tpu.memory_space<vmem>>, vector<1x8x32xf32>,
    } else {
    }
    %c0 = arith.constant 0 : index
    %c0_1 = arith.constant 0 : index
    %c0_2 = arith.constant 0 : index
    %3 = vector.load %arg20[%c0, %c0_1, %c0_2] : memref<1x8x32xf32, #tpu.memory_space<vmem>>, vector<1x8x32xf32>
    %c0_3 = arith.constant 0 : index
    %c0_4 = arith.constant 0 : index
    %c0_5 = arith.constant 0 : index
    %4 = vector.load %arg3[%c0_3, %c0_4, %c0_5] : memref<1x8x8xf32, #tpu.memory_space<vmem>>, vector<1x8x8xf32>
    %c0_6 = arith.constant 0 : index
    %c0_7 = arith.constant 0 : index
    %c0_8 = arith.constant 0 : index
    %5 = vector.load %arg4[%c0_6, %c0_7, %c0_8] : memref<1x8x8xf32, #tpu.memory_space<vmem>>, vector<1x8x8xf32>
    %c0_9 = arith.constant 0 : index
    %c0_10 = arith.constant 0 : index
    %c0_11 = arith.constant 0 : index
    %6 = vector.load %arg5[%c0_9, %c0_10, %c0_11] : memref<1x1x32xf32, #tpu.memory_space<vmem>>, vector<1x1x32xf32>
    %7 = vector.shape_cast %6 : vector<1x1x32xf32> to vector<1x32xf32>
    %c0_12 = arith.constant 0 : index
    %c0_13 = arith.constant 0 : index
    %c0_14 = arith.constant 0 : index
    %8 = vector.load %arg6[%c0_12, %c0_13, %c0_14] : memref<1x1x32xf32, #tpu.memory_space<vmem>>, vector<1x1x32xf32>
    %9 = vector.shape_cast %8 : vector<1x1x32xf32> to vector<1x32xf32>
    %cst = arith.constant dense<0.000000e+00> : vector<1x8xf32>
    %10 = vector.multi_reduction <add>, %3, %cst [2] : vector<1x8x32xf32> to vector<1x8xf32>
    %11 = vector.shape_cast %10 : vector<1x8xf32> to vector<1x8x1xf32>
    %cst_15 = arith.constant 3.200000e+01 : f32
    %12 = vector.broadcast %cst_15 : f32 to vector<1x8x1xf32>
    %13 = arith.divf %11, %12 : vector<1x8x1xf32>
    %14 = vector.broadcast %13 : vector<1x8x1xf32> to vector<1x8x32xf32>
    %15 = arith.subf %3, %14 : vector<1x8x32xf32>
    %16 = arith.mulf %15, %15 : vector<1x8x32xf32>
    %cst_16 = arith.constant dense<0.000000e+00> : vector<1x8xf32>
    %17 = vector.multi_reduction <add>, %16, %cst_16 [2] : vector<1x8x32xf32> to vector<1x8xf32>
    %18 = vector.shape_cast %17 : vector<1x8xf32> to vector<1x8x1xf32>
    %cst_17 = arith.constant 3.100000e+01 : f32
    %19 = vector.broadcast %cst_17 : f32 to vector<1x8x1xf32>
    %20 = arith.divf %18, %19 : vector<1x8x1xf32>
    %21 = math.sqrt %20 : vector<1x8x1xf32>
    %cst_18 = arith.constant 9.99999997E-7 : f32
    %22 = vector.broadcast %cst_18 : f32 to vector<1x8x1xf32>
    %23 = arith.addf %22, %21 : vector<1x8x1xf32>
    %24 = tpu.reciprocal %23 : vector<1x8x1xf32> -> vector<1x8x1xf32>
    %25 = vector.broadcast %13 : vector<1x8x1xf32> to vector<1x8x32xf32>
    %26 = arith.subf %3, %25 : vector<1x8x32xf32>
    %27 = vector.shape_cast %7 : vector<1x32xf32> to vector<1x1x32xf32>
    %28 = vector.broadcast %27 : vector<1x1x32xf32> to vector<1x8x32xf32>
    %29 = arith.mulf %28, %26 : vector<1x8x32xf32>
    %30 = vector.broadcast %24 : vector<1x8x1xf32> to vector<1x8x32xf32>
    %31 = arith.mulf %29, %30 : vector<1x8x32xf32>
    %32 = vector.shape_cast %9 : vector<1x32xf32> to vector<1x1x32xf32>
    %33 = vector.broadcast %32 : vector<1x1x32xf32> to vector<1x8x32xf32>
    %34 = arith.addf %31, %33 : vector<1x8x32xf32>
    %35 = vector.shape_cast %34 : vector<1x8x32xf32> to vector<8x32xf32>
    %c0_19 = arith.constant 0 : index
    %c0_20 = arith.constant 0 : index
    %c0_21 = arith.constant 0 : index
    %36 = vector.load %arg7[%c0_19, %c0_20, %c0_21] : memref<1x32x96xf32, #tpu.memory_space<vmem>>, vector<1x32x96xf32>
    %37 = vector.shape_cast %36 : vector<1x32x96xf32> to vector<32x96xf32>
    %cst_22 = arith.constant dense<0.000000e+00> : vector<8x96xf32>
    %38 = tpu.matmul %35, %37, %cst_22 {dimension_numbers = #tpu.dot_dimension_numbers<[1], [0], [0], [1], [0, 0, 1, 1], [], []>} : vector<8x32xf32>, vector<32x96xf32>, vector<8x96xf32> -> vector<8x96xf32>
    %c0_23 = arith.constant 0 : index
    %c0_24 = arith.constant 0 : index
    %c0_25 = arith.constant 0 : index
    %39 = vector.load %arg8[%c0_23, %c0_24, %c0_25] : memref<1x1x96xf32, #tpu.memory_space<vmem>>, vector<1x1x96xf32>
    %40 = vector.shape_cast %39 : vector<1x1x96xf32> to vector<1x96xf32>
    %41 = vector.broadcast %40 : vector<1x96xf32> to vector<8x96xf32>
    %42 = arith.addf %38, %41 : vector<8x96xf32>
    %43 = vector.extract_strided_slice %42 {offsets = [0, 0], sizes = [8, 32], strides = [1, 1]} : vector<8x96xf32> to vector<8x32xf32>
    %44 = vector.shape_cast %43 : vector<8x32xf32> to vector<1x8x32xf32>
    %45 = vector.extract_strided_slice %42 {offsets = [0, 32], sizes = [8, 32], strides = [1, 1]} : vector<8x96xf32> to vector<8x32xf32>
    %46 = vector.shape_cast %45 : vector<8x32xf32> to vector<1x8x32xf32>
    %47 = vector.extract_strided_slice %42 {offsets = [0, 64], sizes = [8, 32], strides = [1, 1]} : vector<8x96xf32> to vector<8x32xf32>
    %48 = vector.shape_cast %47 : vector<8x32xf32> to vector<1x8x32xf32>
    %49 = vector.extract_strided_slice %44 {offsets = [0, 0, 0], sizes = [1, 8, 8], strides = [1, 1, 1]} : vector<1x8x32xf32> to vector<1x8x8xf32>
    %50 = vector.extract_strided_slice %46 {offsets = [0, 0, 0], sizes = [1, 8, 8], strides = [1, 1, 1]} : vector<1x8x32xf32> to vector<1x8x8xf32>
    %51 = vector.extract_strided_slice %48 {offsets = [0, 0, 0], sizes = [1, 8, 8], strides = [1, 1, 1]} : vector<1x8x32xf32> to vector<1x8x8xf32>
    "tpu.trace_start"() <{level = 10 : i32, message = "bqd,bkd->bqk"}> : () -> ()
    %cst_26 = arith.constant dense<0.000000e+00> : vector<1x8x8xf32>
    %52 = tpu.matmul %49, %50, %cst_26 {dimension_numbers = #tpu.dot_dimension_numbers<[2], [2], [1], [1], [0, 0, 0, 1, 1, 1], [0], [0]>} : vector<1x8x8xf32>, vector<1x8x8xf32>, vector<1x8x8xf32> -> vector<1x8x8xf32>
    "tpu.trace_stop"() : () -> ()
    %cst_27 = arith.constant 0.353553385 : f32
    %53 = vector.broadcast %cst_27 : f32 to vector<1x8x8xf32>
    %54 = arith.mulf %52, %53 : vector<1x8x8xf32>
    %55 = arith.mulf %54, %4 : vector<1x8x8xf32>
    %56 = arith.addf %55, %5 : vector<1x8x8xf32>
    %cst_28 = arith.constant dense<0xFF800000> : vector<1x8xf32>
    %57 = vector.multi_reduction <maximumf>, %56, %cst_28 [2] : vector<1x8x8xf32> to vector<1x8xf32>
    %58 = vector.shape_cast %57 : vector<1x8xf32> to vector<1x8x1xf32>
    %59 = vector.broadcast %58 : vector<1x8x1xf32> to vector<1x8x8xf32>
    %60 = arith.subf %56, %59 : vector<1x8x8xf32>
    %61 = math.exp %60 : vector<1x8x8xf32>
    %cst_29 = arith.constant dense<0.000000e+00> : vector<1x8xf32>
    %62 = vector.multi_reduction <add>, %61, %cst_29 [2] : vector<1x8x8xf32> to vector<1x8xf32>
    %63 = vector.shape_cast %62 : vector<1x8xf32> to vector<1x8x1xf32>
    %64 = tpu.reciprocal %63 : vector<1x8x1xf32> -> vector<1x8x1xf32>
    %65 = vector.broadcast %64 : vector<1x8x1xf32> to vector<1x8x8xf32>
    %66 = arith.mulf %61, %65 : vector<1x8x8xf32>
    "tpu.trace_start"() <{level = 10 : i32, message = "bqk,bkd->bqd"}> : () -> ()
    %cst_30 = arith.constant dense<0.000000e+00> : vector<1x8x8xf32>
    %67 = tpu.matmul %66, %51, %cst_30 {dimension_numbers = #tpu.dot_dimension_numbers<[2], [1], [1], [2], [0, 0, 0, 1, 1, 2], [0], [0]>} : vector<1x8x8xf32>, vector<1x8x8xf32>, vector<1x8x8xf32> -> vector<1x8x8xf32>
    "tpu.trace_stop"() : () -> ()
    %68 = vector.extract_strided_slice %44 {offsets = [0, 0, 8], sizes = [1, 8, 8], strides = [1, 1, 1]} : vector<1x8x32xf32> to vector<1x8x8xf32>
    %69 = vector.extract_strided_slice %46 {offsets = [0, 0, 8], sizes = [1, 8, 8], strides = [1, 1, 1]} : vector<1x8x32xf32> to vector<1x8x8xf32>
    %70 = vector.extract_strided_slice %48 {offsets = [0, 0, 8], sizes = [1, 8, 8], strides = [1, 1, 1]} : vector<1x8x32xf32> to vector<1x8x8xf32>
    "tpu.trace_start"() <{level = 10 : i32, message = "bqd,bkd->bqk"}> : () -> ()
    %cst_31 = arith.constant dense<0.000000e+00> : vector<1x8x8xf32>
    %71 = tpu.matmul %68, %69, %cst_31 {dimension_numbers = #tpu.dot_dimension_numbers<[2], [2], [1], [1], [0, 0, 0, 1, 1, 1], [0], [0]>} : vector<1x8x8xf32>, vector<1x8x8xf32>, vector<1x8x8xf32> -> vector<1x8x8xf32>
    "tpu.trace_stop"() : () -> ()
    %cst_32 = arith.constant 0.353553385 : f32
    %72 = vector.broadcast %cst_32 : f32 to vector<1x8x8xf32>
    %73 = arith.mulf %71, %72 : vector<1x8x8xf32>
    %74 = arith.mulf %73, %4 : vector<1x8x8xf32>
    %75 = arith.addf %74, %5 : vector<1x8x8xf32>
    %cst_33 = arith.constant dense<0xFF800000> : vector<1x8xf32>
    %76 = vector.multi_reduction <maximumf>, %75, %cst_33 [2] : vector<1x8x8xf32> to vector<1x8xf32>
    %77 = vector.shape_cast %76 : vector<1x8xf32> to vector<1x8x1xf32>
    %78 = vector.broadcast %77 : vector<1x8x1xf32> to vector<1x8x8xf32>
    %79 = arith.subf %75, %78 : vector<1x8x8xf32>
    %80 = math.exp %79 : vector<1x8x8xf32>
    %cst_34 = arith.constant dense<0.000000e+00> : vector<1x8xf32>
    %81 = vector.multi_reduction <add>, %80, %cst_34 [2] : vector<1x8x8xf32> to vector<1x8xf32>
    %82 = vector.shape_cast %81 : vector<1x8xf32> to vector<1x8x1xf32>
    %83 = tpu.reciprocal %82 : vector<1x8x1xf32> -> vector<1x8x1xf32>
    %84 = vector.broadcast %83 : vector<1x8x1xf32> to vector<1x8x8xf32>
    %85 = arith.mulf %80, %84 : vector<1x8x8xf32>
    "tpu.trace_start"() <{level = 10 : i32, message = "bqk,bkd->bqd"}> : () -> ()
    %cst_35 = arith.constant dense<0.000000e+00> : vector<1x8x8xf32>
    %86 = tpu.matmul %85, %70, %cst_35 {dimension_numbers = #tpu.dot_dimension_numbers<[2], [1], [1], [2], [0, 0, 0, 1, 1, 2], [0], [0]>} : vector<1x8x8xf32>, vector<1x8x8xf32>, vector<1x8x8xf32> -> vector<1x8x8xf32>
    "tpu.trace_stop"() : () -> ()
    %87 = vector.extract_strided_slice %44 {offsets = [0, 0, 16], sizes = [1, 8, 8], strides = [1, 1, 1]} : vector<1x8x32xf32> to vector<1x8x8xf32>
    %88 = vector.extract_strided_slice %46 {offsets = [0, 0, 16], sizes = [1, 8, 8], strides = [1, 1, 1]} : vector<1x8x32xf32> to vector<1x8x8xf32>
    %89 = vector.extract_strided_slice %48 {offsets = [0, 0, 16], sizes = [1, 8, 8], strides = [1, 1, 1]} : vector<1x8x32xf32> to vector<1x8x8xf32>
    "tpu.trace_start"() <{level = 10 : i32, message = "bqd,bkd->bqk"}> : () -> ()
    %cst_36 = arith.constant dense<0.000000e+00> : vector<1x8x8xf32>
    %90 = tpu.matmul %87, %88, %cst_36 {dimension_numbers = #tpu.dot_dimension_numbers<[2], [2], [1], [1], [0, 0, 0, 1, 1, 1], [0], [0]>} : vector<1x8x8xf32>, vector<1x8x8xf32>, vector<1x8x8xf32> -> vector<1x8x8xf32>
    "tpu.trace_stop"() : () -> ()
    %cst_37 = arith.constant 0.353553385 : f32
    %91 = vector.broadcast %cst_37 : f32 to vector<1x8x8xf32>
    %92 = arith.mulf %90, %91 : vector<1x8x8xf32>
    %93 = arith.mulf %92, %4 : vector<1x8x8xf32>
    %94 = arith.addf %93, %5 : vector<1x8x8xf32>
    %cst_38 = arith.constant dense<0xFF800000> : vector<1x8xf32>
    %95 = vector.multi_reduction <maximumf>, %94, %cst_38 [2] : vector<1x8x8xf32> to vector<1x8xf32>
    %96 = vector.shape_cast %95 : vector<1x8xf32> to vector<1x8x1xf32>
    %97 = vector.broadcast %96 : vector<1x8x1xf32> to vector<1x8x8xf32>
    %98 = arith.subf %94, %97 : vector<1x8x8xf32>
    %99 = math.exp %98 : vector<1x8x8xf32>
    %cst_39 = arith.constant dense<0.000000e+00> : vector<1x8xf32>
    %100 = vector.multi_reduction <add>, %99, %cst_39 [2] : vector<1x8x8xf32> to vector<1x8xf32>
    %101 = vector.shape_cast %100 : vector<1x8xf32> to vector<1x8x1xf32>
    %102 = tpu.reciprocal %101 : vector<1x8x1xf32> -> vector<1x8x1xf32>
    %103 = vector.broadcast %102 : vector<1x8x1xf32> to vector<1x8x8xf32>
    %104 = arith.mulf %99, %103 : vector<1x8x8xf32>
    "tpu.trace_start"() <{level = 10 : i32, message = "bqk,bkd->bqd"}> : () -> ()
    %cst_40 = arith.constant dense<0.000000e+00> : vector<1x8x8xf32>
    %105 = tpu.matmul %104, %89, %cst_40 {dimension_numbers = #tpu.dot_dimension_numbers<[2], [1], [1], [2], [0, 0, 0, 1, 1, 2], [0], [0]>} : vector<1x8x8xf32>, vector<1x8x8xf32>, vector<1x8x8xf32> -> vector<1x8x8xf32>
    "tpu.trace_stop"() : () -> ()
    %106 = vector.extract_strided_slice %44 {offsets = [0, 0, 24], sizes = [1, 8, 8], strides = [1, 1, 1]} : vector<1x8x32xf32> to vector<1x8x8xf32>
    %107 = vector.extract_strided_slice %46 {offsets = [0, 0, 24], sizes = [1, 8, 8], strides = [1, 1, 1]} : vector<1x8x32xf32> to vector<1x8x8xf32>
    %108 = vector.extract_strided_slice %48 {offsets = [0, 0, 24], sizes = [1, 8, 8], strides = [1, 1, 1]} : vector<1x8x32xf32> to vector<1x8x8xf32>
    "tpu.trace_start"() <{level = 10 : i32, message = "bqd,bkd->bqk"}> : () -> ()
    %cst_41 = arith.constant dense<0.000000e+00> : vector<1x8x8xf32>
    %109 = tpu.matmul %106, %107, %cst_41 {dimension_numbers = #tpu.dot_dimension_numbers<[2], [2], [1], [1], [0, 0, 0, 1, 1, 1], [0], [0]>} : vector<1x8x8xf32>, vector<1x8x8xf32>, vector<1x8x8xf32> -> vector<1x8x8xf32>
    "tpu.trace_stop"() : () -> ()
    %cst_42 = arith.constant 0.353553385 : f32
    %110 = vector.broadcast %cst_42 : f32 to vector<1x8x8xf32>
    %111 = arith.mulf %109, %110 : vector<1x8x8xf32>
    %112 = arith.mulf %111, %4 : vector<1x8x8xf32>
    %113 = arith.addf %112, %5 : vector<1x8x8xf32>
    %cst_43 = arith.constant dense<0xFF800000> : vector<1x8xf32>
    %114 = vector.multi_reduction <maximumf>, %113, %cst_43 [2] : vector<1x8x8xf32> to vector<1x8xf32>
    %115 = vector.shape_cast %114 : vector<1x8xf32> to vector<1x8x1xf32>
    %116 = vector.broadcast %115 : vector<1x8x1xf32> to vector<1x8x8xf32>
    %117 = arith.subf %113, %116 : vector<1x8x8xf32>
    %118 = math.exp %117 : vector<1x8x8xf32>
    %cst_44 = arith.constant dense<0.000000e+00> : vector<1x8xf32>
    %119 = vector.multi_reduction <add>, %118, %cst_44 [2] : vector<1x8x8xf32> to vector<1x8xf32>
    %120 = vector.shape_cast %119 : vector<1x8xf32> to vector<1x8x1xf32>
    %121 = tpu.reciprocal %120 : vector<1x8x1xf32> -> vector<1x8x1xf32>
    %122 = vector.broadcast %121 : vector<1x8x1xf32> to vector<1x8x8xf32>
    %123 = arith.mulf %118, %122 : vector<1x8x8xf32>
    "tpu.trace_start"() <{level = 10 : i32, message = "bqk,bkd->bqd"}> : () -> ()
    %cst_45 = arith.constant dense<0.000000e+00> : vector<1x8x8xf32>
    %124 = tpu.matmul %123, %108, %cst_45 {dimension_numbers = #tpu.dot_dimension_numbers<[2], [1], [1], [2], [0, 0, 0, 1, 1, 2], [0], [0]>} : vector<1x8x8xf32>, vector<1x8x8xf32>, vector<1x8x8xf32> -> vector<1x8x8xf32>
    "tpu.trace_stop"() : () -> ()
    %125 = tpu.concatenate %67, %86, %105, %124 in 2 : vector<1x8x8xf32>, vector<1x8x8xf32>, vector<1x8x8xf32>, vector<1x8x8xf32> -> vector<1x8x32xf32>
    %126 = vector.shape_cast %125 : vector<1x8x32xf32> to vector<8x32xf32>
    %c0_46 = arith.constant 0 : index
    %c0_47 = arith.constant 0 : index
    %c0_48 = arith.constant 0 : index
    %127 = vector.load %arg9[%c0_46, %c0_47, %c0_48] : memref<1x32x32xf32, #tpu.memory_space<vmem>>, vector<1x32x32xf32>
    %128 = vector.shape_cast %127 : vector<1x32x32xf32> to vector<32x32xf32>
    %cst_49 = arith.constant dense<0.000000e+00> : vector<8x32xf32>
    %129 = tpu.matmul %126, %128, %cst_49 {dimension_numbers = #tpu.dot_dimension_numbers<[1], [0], [0], [1], [0, 0, 1, 1], [], []>} : vector<8x32xf32>, vector<32x32xf32>, vector<8x32xf32> -> vector<8x32xf32>
    %c0_50 = arith.constant 0 : index
    %c0_51 = arith.constant 0 : index
    %c0_52 = arith.constant 0 : index
    %130 = vector.load %arg10[%c0_50, %c0_51, %c0_52] : memref<1x1x32xf32, #tpu.memory_space<vmem>>, vector<1x1x32xf32>
    %131 = vector.shape_cast %130 : vector<1x1x32xf32> to vector<1x32xf32>
    %132 = vector.broadcast %131 : vector<1x32xf32> to vector<8x32xf32>
    %133 = arith.addf %129, %132 : vector<8x32xf32>
    %134 = vector.shape_cast %133 : vector<8x32xf32> to vector<1x8x32xf32>
    %135 = arith.addf %3, %134 : vector<1x8x32xf32>
    %c0_53 = arith.constant 0 : index
    %c0_54 = arith.constant 0 : index
    %c0_55 = arith.constant 0 : index
    %136 = vector.load %arg11[%c0_53, %c0_54, %c0_55] : memref<1x1x32xf32, #tpu.memory_space<vmem>>, vector<1x1x32xf32>
    %137 = vector.shape_cast %136 : vector<1x1x32xf32> to vector<1x32xf32>
    %c0_56 = arith.constant 0 : index
    %c0_57 = arith.constant 0 : index
    %c0_58 = arith.constant 0 : index
    %138 = vector.load %arg12[%c0_56, %c0_57, %c0_58] : memref<1x1x32xf32, #tpu.memory_space<vmem>>, vector<1x1x32xf32>
    %139 = vector.shape_cast %138 : vector<1x1x32xf32> to vector<1x32xf32>
    %cst_59 = arith.constant dense<0.000000e+00> : vector<1x8xf32>
    %140 = vector.multi_reduction <add>, %135, %cst_59 [2] : vector<1x8x32xf32> to vector<1x8xf32>
    %141 = vector.shape_cast %140 : vector<1x8xf32> to vector<1x8x1xf32>
    %cst_60 = arith.constant 3.200000e+01 : f32
    %142 = vector.broadcast %cst_60 : f32 to vector<1x8x1xf32>
    %143 = arith.divf %141, %142 : vector<1x8x1xf32>
    %144 = vector.broadcast %143 : vector<1x8x1xf32> to vector<1x8x32xf32>
    %145 = arith.subf %135, %144 : vector<1x8x32xf32>
    %146 = arith.mulf %145, %145 : vector<1x8x32xf32>
    %cst_61 = arith.constant dense<0.000000e+00> : vector<1x8xf32>
    %147 = vector.multi_reduction <add>, %146, %cst_61 [2] : vector<1x8x32xf32> to vector<1x8xf32>
    %148 = vector.shape_cast %147 : vector<1x8xf32> to vector<1x8x1xf32>
    %cst_62 = arith.constant 3.100000e+01 : f32
    %149 = vector.broadcast %cst_62 : f32 to vector<1x8x1xf32>
    %150 = arith.divf %148, %149 : vector<1x8x1xf32>
    %151 = math.sqrt %150 : vector<1x8x1xf32>
    %cst_63 = arith.constant 9.99999997E-7 : f32
    %152 = vector.broadcast %cst_63 : f32 to vector<1x8x1xf32>
    %153 = arith.addf %152, %151 : vector<1x8x1xf32>
    %154 = tpu.reciprocal %153 : vector<1x8x1xf32> -> vector<1x8x1xf32>
    %155 = vector.broadcast %143 : vector<1x8x1xf32> to vector<1x8x32xf32>
    %156 = arith.subf %135, %155 : vector<1x8x32xf32>
    %157 = vector.shape_cast %137 : vector<1x32xf32> to vector<1x1x32xf32>
    %158 = vector.broadcast %157 : vector<1x1x32xf32> to vector<1x8x32xf32>
    %159 = arith.mulf %158, %156 : vector<1x8x32xf32>
    %160 = vector.broadcast %154 : vector<1x8x1xf32> to vector<1x8x32xf32>
    %161 = arith.mulf %159, %160 : vector<1x8x32xf32>
    %162 = vector.shape_cast %139 : vector<1x32xf32> to vector<1x1x32xf32>
    %163 = vector.broadcast %162 : vector<1x1x32xf32> to vector<1x8x32xf32>
    %164 = arith.addf %161, %163 : vector<1x8x32xf32>
    %165 = vector.shape_cast %164 : vector<1x8x32xf32> to vector<8x32xf32>
    %c0_64 = arith.constant 0 : index
    %c0_65 = arith.constant 0 : index
    %c0_66 = arith.constant 0 : index
    %166 = vector.load %arg13[%c0_64, %c0_65, %c0_66] : memref<1x32x64xf32, #tpu.memory_space<vmem>>, vector<1x32x64xf32>
    %167 = vector.shape_cast %166 : vector<1x32x64xf32> to vector<32x64xf32>
    %cst_67 = arith.constant dense<0.000000e+00> : vector<8x64xf32>
    %168 = tpu.matmul %165, %167, %cst_67 {dimension_numbers = #tpu.dot_dimension_numbers<[1], [0], [0], [1], [0, 0, 1, 1], [], []>} : vector<8x32xf32>, vector<32x64xf32>, vector<8x64xf32> -> vector<8x64xf32>
    %c0_68 = arith.constant 0 : index
    %c0_69 = arith.constant 0 : index
    %c0_70 = arith.constant 0 : index
    %169 = vector.load %arg14[%c0_68, %c0_69, %c0_70] : memref<1x1x64xf32, #tpu.memory_space<vmem>>, vector<1x1x64xf32>
    %170 = vector.shape_cast %169 : vector<1x1x64xf32> to vector<1x64xf32>
    %171 = vector.broadcast %170 : vector<1x64xf32> to vector<8x64xf32>
    %172 = arith.addf %168, %171 : vector<8x64xf32>
    %cst_71 = arith.constant 0.000000e+00 : f32
    %173 = vector.broadcast %cst_71 : f32 to vector<8x64xf32>
    %174 = arith.maximumf %172, %173 : vector<8x64xf32>
    %c0_72 = arith.constant 0 : index
    %c0_73 = arith.constant 0 : index
    %c0_74 = arith.constant 0 : index
    %175 = vector.load %arg15[%c0_72, %c0_73, %c0_74] : memref<1x64x32xf32, #tpu.memory_space<vmem>>, vector<1x64x32xf32>
    %176 = vector.shape_cast %175 : vector<1x64x32xf32> to vector<64x32xf32>
    %cst_75 = arith.constant dense<0.000000e+00> : vector<8x32xf32>
    %177 = tpu.matmul %174, %176, %cst_75 {dimension_numbers = #tpu.dot_dimension_numbers<[1], [0], [0], [1], [0, 0, 1, 1], [], []>} : vector<8x64xf32>, vector<64x32xf32>, vector<8x32xf32> -> vector<8x32xf32>
    %c0_76 = arith.constant 0 : index
    %c0_77 = arith.constant 0 : index
    %c0_78 = arith.constant 0 : index
    %178 = vector.load %arg16[%c0_76, %c0_77, %c0_78] : memref<1x1x32xf32, #tpu.memory_space<vmem>>, vector<1x1x32xf32>
    %179 = vector.shape_cast %178 : vector<1x1x32xf32> to vector<1x32xf32>
    %180 = vector.broadcast %179 : vector<1x32xf32> to vector<8x32xf32>
    %181 = arith.addf %177, %180 : vector<8x32xf32>
    %182 = vector.shape_cast %181 : vector<8x32xf32> to vector<1x8x32xf32>
    %183 = arith.addf %135, %182 : vector<1x8x32xf32>
    %c0_79 = arith.constant 0 : index
    %c0_80 = arith.constant 0 : index
    %c0_81 = arith.constant 0 : index
    %184 = vector.load %arg20[%c0_79, %c0_80, %c0_81] : memref<1x8x32xf32, #tpu.memory_space<vmem>>, vector<1x8x32xf32>
    tpu.vector_store %arg20[%c0_79, %c0_80, %c0_81], %183 {strides = array<i32>} : memref<1x8x32xf32, #tpu.memory_space<vmem>>, vector<1x8x32xf32>,
    %c1_i32 = arith.constant 1 : i32
    %185 = arith.cmpi eq, %arg1, %c1_i32 : i32
    %186 = arith.extui %185 : i1 to i32
    %c0_i32_82 = arith.constant 0 : i32
    %187 = arith.cmpi ne, %186, %c0_i32_82 : i32
    scf.if %187 {
      %c0_83 = arith.constant 0 : index
      %c0_84 = arith.constant 0 : index
      %188 = vector.load %arg17[%c0_83, %c0_84] : memref<1x32xf32, #tpu.memory_space<vmem>>, vector<1x32xf32>
      %c0_85 = arith.constant 0 : index
      %c0_86 = arith.constant 0 : index
      %189 = vector.load %arg18[%c0_85, %c0_86] : memref<1x32xf32, #tpu.memory_space<vmem>>, vector<1x32xf32>
      %cst_87 = arith.constant dense<0.000000e+00> : vector<1x8xf32>
      %190 = vector.multi_reduction <add>, %183, %cst_87 [2] : vector<1x8x32xf32> to vector<1x8xf32>
      %191 = vector.shape_cast %190 : vector<1x8xf32> to vector<1x8x1xf32>
      %cst_88 = arith.constant 3.200000e+01 : f32
      %192 = vector.broadcast %cst_88 : f32 to vector<1x8x1xf32>
      %193 = arith.divf %191, %192 : vector<1x8x1xf32>
      %194 = vector.broadcast %193 : vector<1x8x1xf32> to vector<1x8x32xf32>
      %195 = arith.subf %183, %194 : vector<1x8x32xf32>
      %196 = arith.mulf %195, %195 : vector<1x8x32xf32>
      %cst_89 = arith.constant dense<0.000000e+00> : vector<1x8xf32>
      %197 = vector.multi_reduction <add>, %196, %cst_89 [2] : vector<1x8x32xf32> to vector<1x8xf32>
      %198 = vector.shape_cast %197 : vector<1x8xf32> to vector<1x8x1xf32>
      %cst_90 = arith.constant 3.100000e+01 : f32
      %199 = vector.broadcast %cst_90 : f32 to vector<1x8x1xf32>
      %200 = arith.divf %198, %199 : vector<1x8x1xf32>
      %201 = math.sqrt %200 : vector<1x8x1xf32>
      %cst_91 = arith.constant 9.99999997E-7 : f32
      %202 = vector.broadcast %cst_91 : f32 to vector<1x8x1xf32>
      %203 = arith.addf %202, %201 : vector<1x8x1xf32>
      %204 = tpu.reciprocal %203 : vector<1x8x1xf32> -> vector<1x8x1xf32>
      %205 = vector.broadcast %193 : vector<1x8x1xf32> to vector<1x8x32xf32>
      %206 = arith.subf %183, %205 : vector<1x8x32xf32>
      %207 = vector.shape_cast %188 : vector<1x32xf32> to vector<1x1x32xf32>
      %208 = vector.broadcast %207 : vector<1x1x32xf32> to vector<1x8x32xf32>
      %209 = arith.mulf %208, %206 : vector<1x8x32xf32>
      %210 = vector.broadcast %204 : vector<1x8x1xf32> to vector<1x8x32xf32>
      %211 = arith.mulf %209, %210 : vector<1x8x32xf32>
      %212 = vector.shape_cast %189 : vector<1x32xf32> to vector<1x1x32xf32>
      %213 = vector.broadcast %212 : vector<1x1x32xf32> to vector<1x8x32xf32>
      %214 = arith.addf %211, %213 : vector<1x8x32xf32>
      %c0_92 = arith.constant 0 : index
      %c0_93 = arith.constant 0 : index
      %c0_94 = arith.constant 0 : index
      %215 = vector.load %arg19[%c0_92, %c0_93, %c0_94] : memref<1x8x32xf32, #tpu.memory_space<vmem>>, vector<1x8x32xf32>
      tpu.vector_store %arg19[%c0_92, %c0_93, %c0_94], %214 {strides = array<i32>} : memref<1x8x32xf32, #tpu.memory_space<vmem>>, vector<1x8x32xf32>,
    } else {
    }
    return
  }
  func.func @transform_0(%arg0: i32, %arg1: i32) -> (i32, i32, i32) {
    %c0_i32 = arith.constant 0 : i32
    %c0_i32_0 = arith.constant 0 : i32
    %c0_i32_1 = arith.constant 0 : i32
    return %arg0, %c0_i32, %c0_i32_0 : i32, i32, i32
  }
  func.func @transform_1(%arg0: i32, %arg1: i32) -> (i32, i32, i32) {
    %c0_i32 = arith.constant 0 : i32
    %c0_i32_0 = arith.constant 0 : i32
    %c0_i32_1 = arith.constant 0 : i32
    return %arg0, %c0_i32, %c0_i32_0 : i32, i32, i32
  }
  func.func @transform_2(%arg0: i32, %arg1: i32) -> (i32, i32, i32) {
    %c0_i32 = arith.constant 0 : i32
    %c0_i32_0 = arith.constant 0 : i32
    %c0_i32_1 = arith.constant 0 : i32
    return %arg0, %c0_i32, %c0_i32_0 : i32, i32, i32
  }
  func.func @transform_3(%arg0: i32, %arg1: i32) -> (i32, i32, i32) {
    %c0_i32 = arith.constant 0 : i32
    %c0_i32_0 = arith.constant 0 : i32
    %c0_i32_1 = arith.constant 0 : i32
    return %arg1, %c0_i32, %c0_i32_0 : i32, i32, i32
  }
  func.func @transform_4(%arg0: i32, %arg1: i32) -> (i32, i32, i32) {
    %c0_i32 = arith.constant 0 : i32
    %c0_i32_0 = arith.constant 0 : i32
    %c0_i32_1 = arith.constant 0 : i32
    return %arg1, %c0_i32, %c0_i32_0 : i32, i32, i32
  }
  func.func @transform_5(%arg0: i32, %arg1: i32) -> (i32, i32, i32) {
    %c0_i32 = arith.constant 0 : i32
    %c0_i32_0 = arith.constant 0 : i32
    %c0_i32_1 = arith.constant 0 : i32
    return %arg1, %c0_i32, %c0_i32_0 : i32, i32, i32
  }
  func.func @transform_6(%arg0: i32, %arg1: i32) -> (i32, i32, i32) {
    %c0_i32 = arith.constant 0 : i32
    %c0_i32_0 = arith.constant 0 : i32
    %c0_i32_1 = arith.constant 0 : i32
    return %arg1, %c0_i32, %c0_i32_0 : i32, i32, i32
  }
  func.func @transform_7(%arg0: i32, %arg1: i32) -> (i32, i32, i32) {
    %c0_i32 = arith.constant 0 : i32
    %c0_i32_0 = arith.constant 0 : i32
    %c0_i32_1 = arith.constant 0 : i32
    return %arg1, %c0_i32, %c0_i32_0 : i32, i32, i32
  }
  func.func @transform_8(%arg0: i32, %arg1: i32) -> (i32, i32, i32) {
    %c0_i32 = arith.constant 0 : i32
    %c0_i32_0 = arith.constant 0 : i32
    %c0_i32_1 = arith.constant 0 : i32
    return %arg1, %c0_i32, %c0_i32_0 : i32, i32, i32
  }
  func.func @transform_9(%arg0: i32, %arg1: i32) -> (i32, i32, i32) {
    %c0_i32 = arith.constant 0 : i32
    %c0_i32_0 = arith.constant 0 : i32
    %c0_i32_1 = arith.constant 0 : i32
    return %arg1, %c0_i32, %c0_i32_0 : i32, i32, i32
  }
  func.func @transform_10(%arg0: i32, %arg1: i32) -> (i32, i32, i32) {
    %c0_i32 = arith.constant 0 : i32
    %c0_i32_0 = arith.constant 0 : i32
    %c0_i32_1 = arith.constant 0 : i32
    return %arg1, %c0_i32, %c0_i32_0 : i32, i32, i32
  }
  func.func @transform_11(%arg0: i32, %arg1: i32) -> (i32, i32, i32) {
    %c0_i32 = arith.constant 0 : i32
    %c0_i32_0 = arith.constant 0 : i32
    %c0_i32_1 = arith.constant 0 : i32
    return %arg1, %c0_i32, %c0_i32_0 : i32, i32, i32
  }
  func.func @transform_12(%arg0: i32, %arg1: i32) -> (i32, i32, i32) {
    %c0_i32 = arith.constant 0 : i32
    %c0_i32_0 = arith.constant 0 : i32
    %c0_i32_1 = arith.constant 0 : i32
    return %arg1, %c0_i32, %c0_i32_0 : i32, i32, i32
  }
  func.func @transform_13(%arg0: i32, %arg1: i32) -> (i32, i32, i32) {
    %c0_i32 = arith.constant 0 : i32
    %c0_i32_0 = arith.constant 0 : i32
    %c0_i32_1 = arith.constant 0 : i32
    return %arg1, %c0_i32, %c0_i32_0 : i32, i32, i32
  }
  func.func @transform_14(%arg0: i32, %arg1: i32) -> (i32, i32, i32) {
    %c0_i32 = arith.constant 0 : i32
    %c0_i32_0 = arith.constant 0 : i32
    %c0_i32_1 = arith.constant 0 : i32
    return %arg1, %c0_i32, %c0_i32_0 : i32, i32, i32
  }
  func.func @transform_15(%arg0: i32, %arg1: i32) -> (i32, i32) {
    %c0_i32 = arith.constant 0 : i32
    %c0_i32_0 = arith.constant 0 : i32
    %c0_i32_1 = arith.constant 0 : i32
    return %c0_i32, %c0_i32_0 : i32, i32
  }
  func.func @transform_16(%arg0: i32, %arg1: i32) -> (i32, i32) {
    %c0_i32 = arith.constant 0 : i32
    %c0_i32_0 = arith.constant 0 : i32
    %c0_i32_1 = arith.constant 0 : i32
    return %c0_i32, %c0_i32_0 : i32, i32
  }
  func.func @transform_17(%arg0: i32, %arg1: i32) -> (i32, i32, i32) {
    %c0_i32 = arith.constant 0 : i32
    %c0_i32_0 = arith.constant 0 : i32
    %c0_i32_1 = arith.constant 0 : i32
    return %arg0, %c0_i32, %c0_i32_0 : i32, i32, i32
  }
}

</mosaic_0001>

<bundles_post_ra>
// kernel: encoder_forward.1
= control target key start
LH: loop header
LB: loop body
LE: loop exit
PB: predicated region body
PF: predicated region fallthrough
CT: control target
= control target key end

     0   :  { %s3087_s0 = inlined_call_operand.vmem [shape: f32[2,8,32], index: 0, kind: input, shape index: {}]   ;;  %s3088_s1 = inlined_call_operand.vmem [shape: f32[2,8,8], index: 1, kind: input, shape index: {}]   ;;  %s3089_s2 = inlined_call_operand.vmem [shape: f32[2,8,8], index: 2, kind: input, shape index: {}]   ;;  %s3090_s3 = inlined_call_operand.vmem [shape: f32[2,1,32], index: 3, kind: input, shape index: {}]   ;;  %s3091_s4 = inlined_call_operand.vmem [shape: f32[2,1,32], index: 4, kind: input, shape index: {}]   ;;  %s3092_s5 = inlined_call_operand.vmem [shape: f32[2,32,96], index: 5, kind: input, shape index: {}]   ;;  %s3093_s6 = inlined_call_operand.vmem [shape: f32[2,1,96], index: 6, kind: input, shape index: {}]   ;;  %s3094_s7 = inlined_call_operand.vmem [shape: f32[2,32,32], index: 7, kind: input, shape index: {}]   ;;  %s3095_s8 = inlined_call_operand.vmem [shape: f32[2,1,32], index: 8, kind: input, shape index: {}]   ;;  %s3096_s9 = inlined_call_operand.vmem [shape: f32[2,1,32], index: 9, kind: input, shape index: {}]   ;;  %s3097_s10 = inlined_call_operand.vmem [shape: f32[2,1,32], index: 10, kind: input, shape index: {}]   ;;  %s3098_s11 = inlined_call_operand.vmem [shape: f32[2,32,64], index: 11, kind: input, shape index: {}]   ;;  %s3099_s12 = inlined_call_operand.vmem [shape: f32[2,1,64], index: 12, kind: input, shape index: {}]   ;;  %s3100_s13 = inlined_call_operand.vmem [shape: f32[2,64,32], index: 13, kind: input, shape index: {}]   ;;  %s3101_s14 = inlined_call_operand.vmem [shape: f32[2,1,32], index: 14, kind: input, shape index: {}]   ;;  %s3102_s15 = inlined_call_operand.vmem [shape: f32[1,32], index: 15, kind: input, shape index: {}]   ;;  %s3103_s16 = inlined_call_operand.vmem [shape: f32[1,32], index: 16, kind: input, shape index: {}]   ;;  %s3104_s17 = inlined_call_operand.hbm [shape: f32[2,8,32], index: 17, kind: output, shape index: {}]  }
   0x1   :  { %3121 = sst [smem:[#allocation20_spill]] %s3087_s0 }
   0x2   :  { %3122 = sst [smem:[#allocation21_spill]] %s3088_s1 }
   0x3   :  { %3123 = sst [smem:[#allocation22_spill]] %s3092_s5 }
   0x4   :  { %3124 = sst [smem:[#allocation23_spill]] %s3094_s7 }
   0x5   :  { %3125 = sst [smem:[#allocation24_spill]] %s3095_s8 }
   0x6   :  { %3126 = sst [smem:[#allocation25_spill]] %s3096_s9 }
   0x7   :  { %3127 = sst [smem:[#allocation26_spill]] %s3099_s12 }
   0x8   :  { %3128 = sst [smem:[#allocation27_spill]] %s3100_s13 }
   0x9   :  { %3129 = sst [smem:[#allocation28_spill]] %s3101_s14 }
   0xa   :  { %3130 = sst [smem:[#allocation29_spill]] %s3102_s15 }
   0xb   :  { %3131 = sst [smem:[#allocation30_spill]] %s3103_s16 }
   0xc   :  { %3132 = sst [smem:[#allocation31_spill]] %s3104_s17 }
   0xd   :  { %22 = vsyncpa [#allocation4], 0 }
   0xe   :  { %24 = vsyncpa [#allocation4 + $0x1], 0  ;;  %s2705_s24 = smov 0   ;;  %s2707_s25 = smov 0  }
   0xf   :  { %s2709_s26 = smov 0   ;;  %s2711_s27 = smov 0  }
  0x10   :  { %s2713_s28 = smov 0   ;;  %s2715_s29 = smov 0  }
  0x11   :  { %s2717_s0 = smov 0   ;;  %s2719_s30 = smov 0  }
  0x12 LB: > { %3133 = sst [smem:[#allocation6_spill]] %s2567_s24  ;;  %s2170_s18 = sadd.s32 4294967295, %s2595_s30   ;;  %s2595_s30 = sphi %s2719_s30, %s30_s30   ;;  %s2591_s0 = sphi %s2717_s0, %s3190_s0   ;;  %s2587_s29 = sphi %s2715_s29, %s3189_s29   ;;  %s2583_s28 = sphi %s2713_s28, %s3188_s28   ;;  %s2579_s27 = sphi %s2711_s27, %s3187_s27   ;;  %s2575_s26 = sphi %s2709_s26, %s3186_s26   ;;  %s2571_s25 = sphi %s2707_s25, %s3185_s25   ;;  %s2567_s24 = sphi %s2705_s24, %s3184_s24  }
  0x13   : > { %3134 = sst [smem:[#allocation7_spill]] %s2571_s25  ;;  %s2171_s19 = sadd.s32 4294967294, %s2595_s30  }
  0x14   : > { %3135 = sst [smem:[#allocation8_spill]] %s2575_s26  ;;  %s39_s1 = sadd.s32 1, %s2587_s29 }
  0x15   : > { %3136 = sst [smem:[#allocation9_spill]] %s2579_s27  ;;  %p40_p0 = scmp.ge.s32.totalorder %s39_s1, 2 }
  0x16   : > { %3137 = sst [smem:[#allocation10_spill]] %s2583_s28  ;;  %s42_s20 = sadd.s32 1, %s2591_s0 }
  0x17   : > { %3138 = sst [smem:[#allocation11_spill]] %s2587_s29  ;;  %p491_p1 = scmp.ne.s32.totalorder %s2575_s26, %s2571_s25 }
  0x18   : > { %3139 = sst [smem:[#allocation12_spill]] %s2591_s0  ;;  %p492_p2 = scmp.eq.s32.totalorder %s2170_s18, 3 }
  0x19   : > { %3140 = sst [smem:[#allocation13_spill]] %s2595_s30  ;;  %s3192_s1 = smov (%p40_p0, %s39_s1), 0 }
  0x1a   : > { %3141 = sst [smem:[#allocation14_spill]] %s3192_s1  ;;  %s3194_s20 = smov (!%p40_p0, %s42_s20), %s2591_s0 }
  0x1b   : > { %p2754_p3 = por %p492_p2, %p491_p1  ;;  %p497_p4 = scmp.ne.s32.totalorder %s2571_s25, %s2567_s24 }
  0x1c   : > { %p44_p5 = scmp.ge.s32.totalorder %s3194_s20, 2  ;;  %p498_p6 = scmp.eq.s32.totalorder %s2171_s19, 3 }
  0x1d   : > { %s3142_s21 = scalar_select %p2754_p3, 1, 0 }
  0x1e   : > { %p2174_p7 = scmp.ge.s32.totalorder %s2595_s30, 1  ;;  %p623_p8 = scmp.lt.s32.totalorder %s2595_s30, 5 }
  0x1f   : > { %3143 = sst [smem:[#allocation15_spill]] %s3142_s21  ;;  %s3196_s20 = smov (%p44_p5, %s3194_s20), 0 }
  0x20   : > { %3144 = sst [smem:[#allocation16_spill]] %s3196_s20  ;;  %p2764_p9 = por %p498_p6, %p497_p4 }
  0x21   : > { %p624_p10 = pnand %p2174_p7, %p623_p8  ;;  %s478_s23 = ssub.s32 %s2591_s0, %s3196_s20 }
  0x22   : > { %s3145_s22 = scalar_select %p2764_p9, 1, 0 }
  0x23   : > { %s481_s18 = sadd.s32 1, %s2575_s26  ;;  %p479_p11 = scmp.eq.s32.totalorder %s478_s23, 0 }
  0x24   : > { %3146 = sst [smem:[#allocation17_spill]] %s3145_s22  ;;  %627 = sbr.rel (%p624_p10) target bundleno = 2931 (0xb73), region = 88 }
  0x25   : > { %s2772_s1 = scalar_select %p479_p11, %s2575_s26, %s481_s18  }
  0x27   : > { %3147 = sst [smem:[#allocation18_spill]] %s2772_s1 }
  0x2b   : > { %s3109_s19 = sand.u32 1, %s2571_s25   ;;  %p726_p12 = scmp.lt.s32.totalorder %s2583_s28, 1 }
  0x2c   : > { %s2778_s29 = sshll.u32 %s3109_s19, 3  ;;  %p738_p13 = scmp.lt.s32.totalorder %s2579_s27, 1 }
  0x2d   : > { %s727_s22 = scalar_select %p726_p12, %s2583_s28, 1 }
  0x2e   : > { %s2783_s24 = scalar_select %p738_p13, %s2579_s27, 1 }
  0x2f   : > { %s2785_s23 = sshll.u32 %s727_s22, 3  ;;  %s3148_s19 = sld [smem:[#allocation20_spill]] }
  0x30   : > { %s2219_s18 = sshll.u32 %s2783_s24, 5  ;;  %s3150_s5 = sld [smem:[#allocation22_spill]] }
  0x31   : > { %s3151_s7 = sld [smem:[#allocation23_spill]]  ;;  %s765_s15 = scalar_lea.vmem %s3097_s10, %s2783_s24 }
  0x32   : > { %s2837_s30 = scalar_lea.vmem %s3098_s11, %s2219_s18  ;;  %s3155_s25 = sld [smem:[#allocation26_spill]] }
  0x33   : > { %s3156_s13 = sld [smem:[#allocation28_spill]]  ;;  %s3157_s20 = sld [smem:[#allocation27_spill]] }
  0x34   : > { %s725_s14 = scalar_lea.vmem [#allocation3], %s2778_s29 }
  0x35   : > { %s729_s0 = scalar_lea.vmem %s3148_s19, %s2785_s23  ;;  %s3158_s19 = sld [smem:[#allocation9_spill]] }
  0x36   : > { %s2811_s12 = scalar_lea.vmem %s3150_s5, %s2219_s18 }
  0x37   : > { %s2820_s28 = scalar_lea.vmem %s3151_s7, %s2219_s18 }
  0x38   : > { %3152 = sst [smem:[#allocation19_spill]] %s2820_s28  ;;  %s773_s7 = scalar_lea.vmem %s3155_s25, %s2783_s24 }
  0x39   : > { %s2222_s28 = sshll.u32 %s2783_s24, 6  ;;  %s781_s8 = scalar_lea.vmem %s3156_s13, %s2783_s24 }
  0x3a   : > { %s2851_s9 = scalar_lea.vmem %s3157_s20, %s2222_s28 }
  0x3b   : > { %p2187_p0 = scmp.ne.s32.totalorder %s3158_s19, 0 }
  0x3c   : > { %v786_v0 = vld [vmem:[%s729_s0] sm:$0xff] (!%p2187_p0)  ;;  %vm787_vm0 = vcmask (!%p2187_p0), 261120  }
  0x3d   : > { %785 = sbr.rel (%p2187_p0) target bundleno = 68 (0x44), region = 92  ;;  %788 = vst.msk [vmem:[#allocation2] sm:$0xff] (!%p2187_p0), %vm787_vm0, %v786_v0 }
  0x44 PF: > { %v2855_v1 = vld [vmem:[#allocation2] sm:$0xff]  ;;  %vm794_vm1 = vcmask 261120   ;;  %v832_v9 = vld [vmem:[%s2811_s12 + $0x8] sm:$0xff]  ;;  %v833_v10 = vld [vmem:[%s2811_s12 + $0x10] sm:$0xff]  ;;  %v2597_v11 = vmov 0.0|0.0   ;;  %vm2598_vm2 = vmmov 0   ;;  %s3159_s28 = scalar_lea.vmem %s3090_s3, %s2783_s24  ;;  %s3160_s18 = scalar_lea.vmem %s3091_s4, %s2783_s24 }
  0x45   : > { %v795_v2 = vsel %vm794_vm1, %v2855_v1, 0.0  ;;  %v831_v8 = vld [vmem:[%s2811_s12] sm:$0xff]  ;;  %2355 = vmatprep.subr.bf16.mxu1 %v2597_v11  ;;  %v834_v13 = vld [vmem:[%s2811_s12 + $0x18] sm:$0xff]  ;;  %v2599_v14 = vmov 0.0   ;;  %s3161_s26 = scalar_lea.vmem %s3093_s6, %s2783_s24  ;;  %s2600_s1 = smov 120   ;;  %vm918_vm5 = vcmask 64512  }
  0x46   : > { %796 = vadd.xlane.f32.xlu0 %v795_v2  ;;  %v2356_v12 = vpack.c.bf16 %v832_v9, %v831_v8  ;;  %2271 = vmatprep.mubr.msk.f32.mxu1 %vm2598_vm2, %v2599_v14  ;;  %v2359_v15 = vpack.c.bf16 %v834_v13, %v833_v10  ;;  %v2188_v24 = vld [vmem:[%s3159_s28] ss:$0 sm:$0xff]  ;;  %s2601_s21 = smov 96   ;;  %s2602_s16 = smov 88   ;;  %vm1600_vm6 = vcmask 130048   ;;  %vm1602_vm7 = vcmask 195584  }
  0x47   : > { %2284 = vmatprep.subr.mxu0 %v2599_v14  ;;  %2286 = vmatprep.mubr.msk.f32.mxu0 %vm2598_vm2, %v2599_v14  ;;  %v2189_v27 = vld [vmem:[%s3160_s18] ss:$0 sm:$0xff]  ;;  %s2603_s22 = smov 80   ;;  %s2604_s17 = smov 112   ;;  %vm1825_vm10 = vcmask 523264  }
  0x48   : > { %2357 = vmatpush3.bf16.msra.mxu1 %v2356_v12  ;;  %v2190_v30 = vld [vmem:[%s3161_s26] ss:$0 sm:$0xff]  ;;  %s2605_s27 = smov 72   ;;  %s2606_s19 = smov 104  }
  0x49   : > { %2358 = vmatprep.subr.bf16.mxu1 %v2597_v11  ;;  %s3162_s28 = sld [smem:[#allocation21_spill]]  ;;  %s3164_s25 = scalar_lea.vmem %s3089_s2, %s2785_s23 }
  0x4a   : > { %v791_v45 = vld [vmem:[%s3164_s25] sm:$0xff]  ;;  %s2608_s13 = smov 48   ;;  %s2609_s26 = smov 40  }
  0x4b   : > { %s3166_s5 = sld [smem:[#allocation24_spill]] }
  0x4c   : > { %2360 = vmatpush3.bf16.msra.mxu1 %v2359_v15 }
  0x4d   : > { %2274 = vmatprep.subr.mxu1 %v2599_v14 }
  0x4f   : > { %s3163_s0 = scalar_lea.vmem %s3162_s28, %s2785_s23  ;;  %s2607_s23 = smov 64  }
  0x50   : > { %v790_v41 = vld [vmem:[%s3163_s0] sm:$0xff]  ;;  %s3168_s0 = sld [smem:[#allocation25_spill]] }
  0x51   : > { %s3167_s12 = scalar_lea.vmem %s3166_s5, %s2783_s24 }
  0x56   : > { %s3169_s20 = scalar_lea.vmem %s3168_s0, %s2783_s24 }
  0xd3   : > { %v797_v3 = vpop.xlane.xlu0 %796 }
  0xd4   : > { %v799_v4 = vmul.f32 0.03125, %v797_v3 }
  0xd6   : > { %v800_v5 = vsub.f32 %v2855_v1, %v799_v4 }
  0xd8   : > { %v801_v6 = vmul.f32 %v800_v5, %v800_v5  ;;  %v822_v25 = vmul.f32 %v2188_v24, %v800_v5 }
  0xda   : > { %v802_v7 = vsel %vm794_vm1, %v801_v6, 0.0 }
  0xdb   : > { %803 = vadd.xlane.f32.xlu0 %v802_v7 }
 0x168   : > { %v804_v16 = vpop.xlane.xlu0 %803 }
 0x169   : > { %v806_v17 = vmul.f32 0.032258064, %v804_v16 }
 0x16b   : > { %2473 = vrsqrt.f32 %v806_v17  ;;  %vm809_vm3 = vcmp.eq.f32.partialorder %v806_v17, inf  ;;  %v812_v20 = vand.u32 2147483648, %v806_v17  ;;  %vm811_vm4 = vcmp.eq.f32.partialorder %v806_v17, 0.0 }
 0x175   : > { %v2474_v18 = vpop.eup %2473 }
 0x176   : > { %v808_v19 = vmul.f32 %v2474_v18, %v806_v17 }
 0x178   : > { %v810_v21 = vsel %vm809_vm3, %v806_v17, %v808_v19 }
 0x179   : > { %v813_v22 = vsel %vm811_vm4, %v812_v20, %v810_v21 }
 0x17a   : > { %v814_v23 = vadd.f32 1e-06, %v813_v22 }
 0x17c   : > { %2475 = vrcp.f32 %v814_v23 }
 0x186   : > { %v2476_v26 = vpop.eup %2475 }
 0x187   : > { %v823_v28 = vmul.f32 %v2476_v26, %v822_v25 }
 0x189   : > { %v830_v29 = vadd.f32 %v2189_v27, %v823_v28 }
 0x18b   : > { %2272 = vmatmul.mubr.msk.f32.vlgmr.msra.gmra.mrb[0].mxu1 %vm794_vm1, %v830_v29 }
 0x18c   : > { %2276 = vmatprep.mubr.msk.f32.mxu1 %vm2598_vm2, %v2599_v14 }
 0x25e   : > { %v911_v31 = vpop.f32.mrb[0].mxu1 }
 0x25f   : > { %v2891_v32 = vadd.f32 %v2190_v30, %v911_v31  ;;  %v2273_v33 = vpop.f32.mrb[1].mxu1 }
 0x261   : > { %1083 = vrot.lane.b32.xlu0 %v2891_v32, %s2600_s1  ;;  %916 = vrot.lane.b32.xlu1 %v2891_v32, %s2601_s21  ;;  %s2610_s1 = smov 56   ;;  %s3165_s21 = sld [smem:[#allocation19_spill]] }
 0x265   : > { %1085 = vrot.lane.b32.xlu1 %v2891_v32, %s2602_s16  ;;  %s2611_s16 = smov 8  }
 0x269   : > { %1253 = vrot.lane.b32.xlu1 %v2891_v32, %s2603_s22  ;;  %s2612_s22 = smov 16  }
 0x26d   : > { %1251 = vrot.lane.b32.xlu1 %v2891_v32, %s2604_s17  ;;  %s2613_s17 = smov 24  }
 0x271   : > { %1421 = vrot.lane.b32.xlu1 %v2891_v32, %s2605_s27 }
 0x275   : > { %1419 = vrot.lane.b32.xlu1 %v2891_v32, %s2606_s19 }
 0x2d3   : > { %v917_v34 = vpop.permute.xlu1 %916  ;;  %v1084_v36 = vpop.permute.xlu0 %1083 }
 0x2d4   : > { %2275 = vmatpush3.xpose.msk.msra.mxu1 %vm918_vm5, %v917_v34 }
 0x2d5   : > { %2279 = vmatprep.subr.mxu1 %v2599_v14 }
 0x2d7   : > { %2277 = vmatmul.mubr.msk.f32.vlgmr.msra.gmra.mrb[2].mxu1 %vm918_vm5, %v2891_v32  ;;  %v1086_v35 = vpop.permute.xlu1 %1085 }
 0x2d8   : > { %2285 = vmatpush3.xpose.msk.msra.mxu0 %vm918_vm5, %v1086_v35  ;;  %2281 = vmatprep.mubr.msk.f32.mxu1 %vm2598_vm2, %v2599_v14 }
 0x2d9   : > { %2294 = vmatprep.subr.mxu0 %v2599_v14 }
 0x2db   : > { %2287 = vmatmul.mubr.msk.f32.vlgmr.msra.gmra.mrb[0].mxu0 %vm918_vm5, %v1084_v36  ;;  %v1254_v37 = vpop.permute.xlu1 %1253 }
 0x2dc   : > { %2295 = vmatpush3.xpose.msk.msra.mxu0 %vm918_vm5, %v1254_v37  ;;  %2296 = vmatprep.mubr.msk.f32.mxu0 %vm2598_vm2, %v2599_v14 }
 0x2dd   : > { %2304 = vmatprep.subr.mxu0 %v2599_v14 }
 0x2df   : > { %v1252_v38 = vpop.permute.xlu1 %1251 }
 0x2e0   : > { %2297 = vmatmul.mubr.msk.f32.vlgmr.msra.gmra.mrb[2].mxu0 %vm918_vm5, %v1252_v38 }
 0x2e1   : > { %2306 = vmatprep.mubr.msk.f32.mxu0 %vm2598_vm2, %v2599_v14 }
 0x2e3   : > { %v1422_v39 = vpop.permute.xlu1 %1421 }
 0x2e4   : > { %2305 = vmatpush3.xpose.msk.msra.mxu0 %vm918_vm5, %v1422_v39 }
 0x2e5   : > { %2361 = vmatprep.subr.bf16.mxu0 %v2597_v11 }
 0x2e7   : > { %v1420_v40 = vpop.permute.xlu1 %1419 }
 0x2e8   : > { %2307 = vmatmul.mubr.msk.f32.vlgmr.msra.gmra.mrb[4].mxu0 %vm918_vm5, %v1420_v40 }
 0x2e9   : > { %2322 = vmatprep.mubr.msk.f32.mxu0 %vm2598_vm2, %v2599_v14 }
 0x3aa   : > { %v989_v42 = vpop.f32.mrb[2].mxu1 }
 0x3ab   : > { %v993_v43 = vmul.f32 0.35355338, %v989_v42  ;;  %v2278_v44 = vpop.f32.mrb[3].mxu1  ;;  %v1604_v42 = vld [vmem:[%s3165_s21] sm:$0xff] }
 0x3ad   : > { %v994_v46 = vmul.f32 %v993_v43, %v790_v41  ;;  %v1605_v43 = vld [vmem:[%s3165_s21 + $0x8] sm:$0xff] }
 0x3ae   : > { %v1157_v47 = vpop.f32.mrb[0].mxu0  ;;  %v2362_v44 = vpack.c.bf16 %v1605_v43, %v1604_v42 }
 0x3af   : > { %v1161_v48 = vmul.f32 0.35355338, %v1157_v47  ;;  %v2288_v49 = vpop.f32.mrb[1].mxu0  ;;  %v995_v50 = vadd.f32 %v994_v46, %v791_v45  ;;  %v1606_v47 = vld [vmem:[%s3165_s21 + $0x10] sm:$0xff] }
 0x3b0   : > { %2363 = vmatpush3.bf16.msra.mxu0 %v2362_v44 }
 0x3b1   : > { %v1162_v51 = vmul.f32 %v1161_v48, %v790_v41  ;;  %v996_v52 = vsel %vm918_vm5, %v995_v50, -inf  ;;  %2364 = vmatprep.subr.bf16.mxu0 %v2597_v11  ;;  %v1607_v48 = vld [vmem:[%s3165_s21 + $0x18] sm:$0xff] }
 0x3b2   : > { %997 = vmax.xlane.f32.xlu1 %v996_v52  ;;  %v2365_v49 = vpack.c.bf16 %v1607_v48, %v1606_v47 }
 0x3b3   : > { %v1325_v53 = vpop.f32.mrb[2].mxu0  ;;  %v1163_v54 = vadd.f32 %v1162_v51, %v791_v45 }
 0x3b4   : > { %v1329_v55 = vmul.f32 0.35355338, %v1325_v53  ;;  %v2298_v56 = vpop.f32.mrb[3].mxu0  ;;  %2366 = vmatpush3.bf16.msra.mxu0 %v2365_v49 }
 0x3b5   : > { %v1164_v57 = vsel %vm918_vm5, %v1163_v54, -inf  ;;  %2373 = vmatprep.subr.bf16.mxu0 %v2597_v11 }
 0x3b6   : > { %v1330_v58 = vmul.f32 %v1329_v55, %v790_v41  ;;  %1165 = vmax.xlane.f32.xlu0 %v1164_v57 }
 0x3b8   : > { %v1331_v59 = vadd.f32 %v1330_v58, %v791_v45 }
 0x3ba   : > { %v1332_v60 = vsel %vm918_vm5, %v1331_v59, -inf }
 0x3bb   : > { %v1493_v61 = vpop.f32.mrb[4].mxu0  ;;  %1333 = vmax.xlane.f32.xlu1 %v1332_v60 }
 0x3bc   : > { %v1497_v62 = vmul.f32 0.35355338, %v1493_v61  ;;  %v2308_v63 = vpop.f32.mrb[5].mxu0 }
 0x3be   : > { %v1498_v0 = vmul.f32 %v1497_v62, %v790_v41  ;;  %v2204_v62 = vld [vmem:[%s3167_s12] ss:$0 sm:$0xff] }
 0x3c0   : > { %v1499_v2 = vadd.f32 %v1498_v0, %v791_v45 }
 0x3c2   : > { %v1500_v3 = vsel %vm918_vm5, %v1499_v2, -inf }
 0x3c3   : > { %1501 = vmax.xlane.f32.xlu0 %v1500_v3 }
 0x3cc   : > { %1007 = vrot.lane.b32.xlu1 %v2891_v32, %s2607_s23 }
 0x43f   : > { %v998_v4 = vpop.xlane.xlu1 %997 }
 0x440   : > { %v999_v5 = vsub.f32 %v995_v50, %v998_v4 }
 0x442   : > { %v1000_v6 = vmul.f32 1.442695, %v999_v5 }
 0x443   : > { %v1166_v7 = vpop.xlane.xlu0 %1165 }
 0x444   : > { %2477 = vpow2.f32 %v1000_v6  ;;  %v1167_v8 = vsub.f32 %v1163_v54, %v1166_v7 }
 0x446   : > { %v1168_v9 = vmul.f32 1.442695, %v1167_v8 }
 0x448   : > { %2479 = vpow2.f32 %v1168_v9  ;;  %v1334_v10 = vpop.xlane.xlu1 %1333  ;;  %v1725_v9 = vld [vmem:[%s2837_s30] sm:$0xff] }
 0x449   : > { %v1335_v12 = vsub.f32 %v1331_v59, %v1334_v10  ;;  %v1726_v10 = vld [vmem:[%s2837_s30 + $0x8] sm:$0xff] }
 0x44b   : > { %v1336_v13 = vmul.f32 1.442695, %v1335_v12  ;;  %v2368_v12 = vpack.c.bf16 %v1726_v10, %v1725_v9 }
 0x44c   : > { %v1008_v15 = vpop.permute.xlu1 %1007 }
 0x44d   : > { %2481 = vpow2.f32 %v1336_v13  ;;  %2280 = vmatpush3.msra.mxu1 %v1008_v15  ;;  %v1728_v13 = vld [vmem:[%s2837_s30 + $0x18] sm:$0xff] }
 0x44e   : > { %v2478_v16 = vpop.eup %2477  ;;  %2289 = vmatprep.subr.mxu1 %v2599_v14 }
 0x44f   : > { %v1002_v17 = vsel %vm918_vm5, %v2478_v16, 0.0 }
 0x450   : > { %v1502_v18 = vpop.xlane.xlu0 %1501  ;;  %1003 = vadd.xlane.f32.xlu1 %v1002_v17  ;;  %v1811_v17 = vld [vmem:[%s2851_s9 + $0x8] sm:$0xff] }
 0x451   : > { %v1503_v19 = vsub.f32 %v1499_v2, %v1502_v18  ;;  %v1812_v18 = vld [vmem:[%s2851_s9 + $0x10] sm:$0xff] }
 0x452   : > { %v2480_v20 = vpop.eup %2479 }
 0x453   : > { %v1504_v21 = vmul.f32 1.442695, %v1503_v19  ;;  %v1170_v22 = vsel %vm918_vm5, %v2480_v20, 0.0 }
 0x454   : > { %1171 = vadd.xlane.f32.xlu0 %v1170_v22  ;;  %v1814_v22 = vld [vmem:[%s2851_s9 + $0x20] sm:$0xff] }
 0x455   : > { %2483 = vpow2.f32 %v1504_v21 }
 0x457   : > { %v2482_v23 = vpop.eup %2481 }
 0x458   : > { %v1338_v24 = vsel %vm918_vm5, %v2482_v23, 0.0 }
 0x459   : > { %1339 = vadd.xlane.f32.xlu1 %v1338_v24 }
 0x45f   : > { %v2484_v25 = vpop.eup %2483 }
 0x460   : > { %v1506_v26 = vsel %vm918_vm5, %v2484_v25, 0.0 }
 0x461   : > { %1507 = vadd.xlane.f32.xlu0 %v1506_v26 }
 0x46a   : > { %1343 = vrot.lane.b32.xlu1 %v2891_v32, %s2608_s13 }
 0x46e   : > { %1511 = vrot.lane.b32.xlu1 %v2891_v32, %s2609_s26 }
 0x477   : > { %1175 = vrot.lane.b32.xlu0 %v2891_v32, %s2610_s1 }
 0x4dd   : > { %v1004_v27 = vpop.xlane.xlu1 %1003 }
 0x4de   : > { %2485 = vrcp.f32 %v1004_v27 }
 0x4e1   : > { %v1172_v28 = vpop.xlane.xlu0 %1171 }
 0x4e2   : > { %2487 = vrcp.f32 %v1172_v28 }
 0x4e6   : > { %v1340_v29 = vpop.xlane.xlu1 %1339 }
 0x4e7   : > { %2489 = vrcp.f32 %v1340_v29 }
 0x4e8   : > { %v2486_v30 = vpop.eup %2485 }
 0x4e9   : > { %v1006_v31 = vmul.f32 %v2486_v30, %v2478_v16  ;;  %v1810_v16 = vld [vmem:[%s2851_s9] sm:$0xff] }
 0x4ea   : > { %v1344_v36 = vpop.permute.xlu1 %1343  ;;  %v2374_v19 = vpack.c.bf16 %v1811_v17, %v1810_v16 }
 0x4eb   : > { %2282 = vmatmul.mubr.msk.f32.vlgmr.msra.gmra.mrb[4].mxu1 %vm918_vm5, %v1006_v31 }
 0x4ec   : > { %2291 = vmatprep.mubr.msk.f32.mxu1 %vm2598_vm2, %v2599_v14  ;;  %v2488_v34 = vpop.eup %2487 }
 0x4ed   : > { %v1174_v35 = vmul.f32 %v2488_v34, %v2480_v20  ;;  %v1813_v20 = vld [vmem:[%s2851_s9 + $0x18] sm:$0xff] }
 0x4ee   : > { %v1508_v33 = vpop.xlane.xlu0 %1507  ;;  %v1512_v39 = vpop.permute.xlu1 %1511  ;;  %v2377_v21 = vpack.c.bf16 %v1813_v20, %v1812_v18 }
 0x4ef   : > { %2491 = vrcp.f32 %v1508_v33 }
 0x4f1   : > { %v2490_v32 = vpop.eup %2489 }
 0x4f2   : > { %v1176_v37 = vpop.permute.xlu0 %1175  ;;  %v1342_v38 = vmul.f32 %v2490_v32, %v2482_v23  ;;  %v1815_v23 = vld [vmem:[%s2851_s9 + $0x28] sm:$0xff] }
 0x4f3   : > { %2290 = vmatpush3.msra.mxu1 %v1176_v37  ;;  %v2380_v24 = vpack.c.bf16 %v1815_v23, %v1814_v22 }
 0x4f4   : > { %2292 = vmatmul.mubr.msk.f32.vlgmr.msra.gmra.mrb[6].mxu1 %vm918_vm5, %v1174_v35  ;;  %2299 = vmatprep.subr.mxu1 %v2599_v14 }
 0x4f5   : > { %2300 = vmatpush3.msra.mxu1 %v1344_v36  ;;  %2301 = vmatprep.mubr.msk.f32.mxu1 %vm2598_vm2, %v2599_v14  ;;  %v2207_v36 = vld [vmem:[%s765_s15] ss:$0 sm:$0xff] }
 0x4f6   : > { %2309 = vmatprep.subr.mxu1 %v2599_v14 }
 0x4f8   : > { %2302 = vmatmul.mubr.msk.f32.vlgmr.msra.gmra.mrb[8].mxu1 %vm918_vm5, %v1342_v38  ;;  %v1816_v38 = vld [vmem:[%s2851_s9 + $0x30] sm:$0xff] }
 0x4f9   : > { %v2492_v40 = vpop.eup %2491  ;;  %2310 = vmatpush3.msra.mxu1 %v1512_v39  ;;  %2311 = vmatprep.mubr.msk.f32.mxu1 %vm2598_vm2, %v2599_v14  ;;  %v1817_v39 = vld [vmem:[%s2851_s9 + $0x38] sm:$0xff]  ;;  %s3172_s9 = sld [smem:[#allocation9_spill]] }
 0x4fa   : > { %v1510_v41 = vmul.f32 %v2492_v40, %v2484_v25  ;;  %2367 = vmatprep.subr.bf16.mxu1 %v2597_v11  ;;  %v2383_v40 = vpack.c.bf16 %v1817_v39, %v1816_v38 }
 0x4fc   : > { %2312 = vmatmul.mubr.msk.f32.vlgmr.msra.gmra.mrb[10].mxu1 %vm918_vm5, %v1510_v41  ;;  %v2208_v41 = vld [vmem:[%s773_s7] ss:$0 sm:$0xff] }
 0x4fd   : > { %2333 = vmatprep.mubr.msk.f32.mxu1 %vm2598_vm2, %v2599_v14  ;;  %2369 = vmatpush3.bf16.msra.mxu1 %v2368_v12 }
 0x4fe   : > { %2370 = vmatprep.subr.bf16.mxu1 %v2597_v11 }
 0x4ff   : > { %p2212_p1 = scmp.ne.s32.totalorder %s3172_s9, 1 }
 0x500   : > { %s3173_s24 = sld [smem:[#allocation29_spill]] (!%p2212_p1) }
 0x5be   : > { %v1079_v45 = vpop.f32.mrb[4].mxu1 }
 0x5bf   : > { %v2283_v46 = vpop.f32.mrb[5].mxu1 }
 0x5c0   : > { %v2210_v46 = vld [vmem:[%s781_s8] ss:$0 sm:$0xff] }
 0x5c7   : > { %v1247_v50 = vpop.f32.mrb[6].mxu1 }
 0x5c8   : > { %1588 = vrot.lane.b32.xlu0 %v1247_v50, %s2611_s16  ;;  %v2293_v51 = vpop.f32.mrb[7].mxu1 }
 0x5cb   : > { %v1415_v52 = vpop.f32.mrb[8].mxu1 }
 0x5cc   : > { %1592 = vrot.lane.b32.xlu1 %v1415_v52, %s2612_s22  ;;  %v2303_v53 = vpop.f32.mrb[9].mxu1 }
 0x5cf   : > { %v1583_v54 = vpop.f32.mrb[10].mxu1 }
 0x5d0   : > { %1596 = vrot.lane.b32.xlu0 %v1583_v54, %s2613_s17  ;;  %v2313_v55 = vpop.f32.mrb[11].mxu1  ;;  %s3174_s17 = sld [smem:[#allocation30_spill]] (!%p2212_p1) }
 0x63a   : > { %v1589_v56 = vpop.permute.xlu0 %1588 }
 0x63b   : > { %v1599_v58 = vsel %vm918_vm5, %v1079_v45, %v1589_v56 }
 0x63e   : > { %v1593_v57 = vpop.permute.xlu1 %1592 }
 0x63f   : > { %v1601_v59 = vsel %vm1600_vm6, %v1599_v58, %v1593_v57 }
 0x642   : > { %v1597_v60 = vpop.permute.xlu0 %1596 }
 0x643   : > { %v1603_v61 = vsel %vm1602_vm7, %v1601_v59, %v1597_v60 }
 0x644   : > { %2323 = vmatmul.mubr.msk.f32.vlgmr.msra.gmra.mrb[6].mxu0 %vm794_vm1, %v1603_v61 }
 0x645   : > { %2352 = vmatprep.mubr.msk.f32.mxu0 %vm2598_vm2, %v2599_v14  ;;  %2375 = vmatpush3.bf16.msra.mxu0 %v2374_v19 }
 0x646   : > { %2376 = vmatprep.subr.bf16.mxu0 %v2597_v11 }
 0x649   : > { %2378 = vmatpush3.bf16.msra.mxu0 %v2377_v21 }
 0x64a   : > { %2379 = vmatprep.subr.bf16.mxu0 %v2597_v11 }
 0x64d   : > { %2381 = vmatpush3.bf16.msra.mxu0 %v2380_v24 }
 0x64e   : > { %2382 = vmatprep.subr.bf16.mxu0 %v2597_v11  ;;  %v2206_v11 = vld [vmem:[%s3169_s20] ss:$0 sm:$0xff] }
 0x651   : > { %2384 = vmatpush3.bf16.msra.mxu0 %v2383_v40 }
 0x717   : > { %v1684_v63 = vpop.f32.mrb[6].mxu0 }
 0x718   : > { %v1685_v0 = vadd.f32 %v2204_v62, %v1684_v63  ;;  %v2324_v2 = vpop.f32.mrb[7].mxu0 }
 0x719   : > { %v2213_v2 = vld [vmem:[%s3173_s24] ss:$0 sm:$0xff] (!%p2212_p1) }
 0x71a   : > { %v2975_v3 = vadd.f32 %v1685_v0, %v2855_v1  ;;  %v1727_v1 = vld [vmem:[%s2837_s30 + $0x10] sm:$0xff] }
 0x71b   : > { %v2371_v15 = vpack.c.bf16 %v1728_v13, %v1727_v1 }
 0x71c   : > { %v1691_v4 = vsel %vm794_vm1, %v2975_v3, 0.0 }
 0x71d   : > { %1692 = vadd.xlane.f32.xlu1 %v1691_v4  ;;  %2372 = vmatpush3.bf16.msra.mxu1 %v2371_v15 }
 0x7aa   : > { %v1693_v5 = vpop.xlane.xlu1 %1692 }
 0x7ab   : > { %v1694_v14 = vmul.f32 0.03125, %v1693_v5  ;;  %v2214_v5 = vld [vmem:[%s3174_s17] ss:$0 sm:$0xff] (!%p2212_p1) }
 0x7ad   : > { %v1695_v6 = vsub.f32 %v2975_v3, %v1694_v14 }
 0x7af   : > { %v1696_v7 = vmul.f32 %v1695_v6, %v1695_v6  ;;  %v1716_v34 = vmul.f32 %v2206_v11, %v1695_v6 }
 0x7b1   : > { %v1697_v8 = vsel %vm794_vm1, %v1696_v7, 0.0 }
 0x7b2   : > { %1698 = vadd.xlane.f32.xlu0 %v1697_v8 }
 0x83f   : > { %v1699_v25 = vpop.xlane.xlu0 %1698 }
 0x840   : > { %v1700_v26 = vmul.f32 0.032258064, %v1699_v25 }
 0x842   : > { %2493 = vrsqrt.f32 %v1700_v26  ;;  %vm1703_vm8 = vcmp.eq.f32.partialorder %v1700_v26, inf  ;;  %v1706_v29 = vand.u32 2147483648, %v1700_v26  ;;  %vm1705_vm9 = vcmp.eq.f32.partialorder %v1700_v26, 0.0 }
 0x84c   : > { %v2494_v27 = vpop.eup %2493 }
 0x84d   : > { %v1702_v28 = vmul.f32 %v2494_v27, %v1700_v26 }
 0x84f   : > { %v1704_v30 = vsel %vm1703_vm8, %v1700_v26, %v1702_v28 }
 0x850   : > { %v1707_v31 = vsel %vm1705_vm9, %v1706_v29, %v1704_v30 }
 0x851   : > { %v1708_v33 = vadd.f32 1e-06, %v1707_v31 }
 0x853   : > { %2495 = vrcp.f32 %v1708_v33 }
 0x85d   : > { %v2496_v35 = vpop.eup %2495 }
 0x85e   : > { %v1717_v37 = vmul.f32 %v2496_v35, %v1716_v34 }
 0x860   : > { %v1724_v32 = vadd.f32 %v2207_v36, %v1717_v37 }
 0x862   : > { %2334 = vmatmul.mubr.msk.f32.vlgmr.msra.gmra.mrb[12].mxu1 %vm794_vm1, %v1724_v32 }
 0x935   : > { %v1805_v42 = vpop.f32.mrb[12].mxu1 }
 0x936   : > { %v1806_v43 = vadd.f32 %v2208_v41, %v1805_v42  ;;  %v2335_v44 = vpop.f32.mrb[13].mxu1 }
 0x938   : > { %v1809_v45 = vmax.f32 %v1806_v43, 0.0 }
 0x93a   : > { %2353 = vmatmul.mubr.msk.f32.vlgmr.msra.gmra.mrb[8].mxu0 %vm1825_vm10, %v1809_v45 }
 0xa0c   : > { %1904 = sbr.rel (%p2212_p1) target bundleno = 2905 (0xb59), region = 96 }
 0xa0d   : > { %v1895_v47 = vpop.f32.mrb[8].mxu0 }
 0xa0e   : > { %v1896_v48 = vadd.f32 %v2210_v46, %v1895_v47  ;;  %v2354_v49 = vpop.f32.mrb[9].mxu0 }
 0xa10   : > { %v1899_v50 = vadd.f32 %v1896_v48, %v2975_v3 }
 0xa12   : > { %1900 = vst.msk [vmem:[#allocation2] sm:$0xff] %vm794_vm1, %v1899_v50  ;;  %v1907_v51 = vsel (!%p2212_p1), %vm794_vm1, %v1899_v50, 0.0 }
 0xa13   : > { %1908 = vadd.xlane.f32.xlu0 %v1907_v51 }
 0xaa0   : > { %v1909_v52 = vpop.xlane.xlu0 %1908 }
 0xaa1   : > { %v1910_v53 = vmul.f32 0.03125, %v1909_v52 }
 0xaa3   : > { %v1911_v54 = vsub.f32 %v1899_v50, %v1910_v53 }
 0xaa5   : > { %v1912_v55 = vmul.f32 %v1911_v54, %v1911_v54  ;;  %v1932_v3 = vmul.f32 %v2213_v2, %v1911_v54 }
 0xaa7   : > { %v1913_v56 = vsel %vm794_vm1, %v1912_v55, 0.0 }
 0xaa8   : > { %1914 = vadd.xlane.f32.xlu0 %v1913_v56 }
 0xb35   : > { %v1915_v57 = vpop.xlane.xlu0 %1914 }
 0xb36   : > { %v1916_v58 = vmul.f32 0.032258064, %v1915_v57 }
 0xb38   : > { %2497 = vrsqrt.f32 %v1916_v58  ;;  %vm1919_vm11 = vcmp.eq.f32.partialorder %v1916_v58, inf  ;;  %v1922_v61 = vand.u32 2147483648, %v1916_v58  ;;  %vm1921_vm12 = vcmp.eq.f32.partialorder %v1916_v58, 0.0 }
 0xb42   : > { %v2498_v59 = vpop.eup %2497 }
 0xb43   : > { %v1918_v60 = vmul.f32 %v2498_v59, %v1916_v58 }
 0xb45   : > { %v1920_v62 = vsel %vm1919_vm11, %v1916_v58, %v1918_v60 }
 0xb46   : > { %v1923_v63 = vsel %vm1921_vm12, %v1922_v61, %v1920_v62 }
 0xb47   : > { %v1924_v0 = vadd.f32 1e-06, %v1923_v63 }
 0xb49   : > { %2499 = vrcp.f32 %v1924_v0 }
 0xb53   : > { %v2500_v4 = vpop.eup %2499 }
 0xb54   : > { %v1933_v14 = vmul.f32 %v2500_v4, %v1932_v3 }
 0xb56   : > { %v1940_v6 = vadd.f32 %v2214_v5, %v1933_v14 }
 0xb58   : > { %1941 = vst.msk [vmem:[%s725_s14] sm:$0xff] %vm794_vm1, %v1940_v6 }
 0xb59 PF: > { %s3175_s27 = sld [smem:[#allocation10_spill]]  ;;  %s3176_s19 = sld [smem:[#allocation7_spill]] }
 0xb5a   : > { %s3178_s0 = sld [smem:[#allocation31_spill]]  ;;  %s1956_s25 = sshll.u32 %s725_s14, 4  ;;  %s1957_s25 = int_to_ptr.vmem [resolvable:$true] %s1956_s25 }
 0xb5b   : > { %s2501_s26 = scalar_lea.vmem %s1957_s25, 128  ;;  %s2614_s15 = smov [#allocation3]  }
 0xb5c   : > { %p2502_p2 = scmp.ne.s32.totalorder %s1957_s25, %s2501_s26  ;;  %s2505_s1 = sshll.u32 %s2614_s15, 4  ;;  %s2506_s1 = int_to_ptr.vmem [resolvable:$false] %s2505_s1 }
 0xb5d   : > { %s2507_s21 = scalar_lea.vmem %s2506_s1, 256  ;;  %p2508_p6 = scmp.lt.s32.totalorder %s1957_s25, %s2506_s1 }
 0xb5e   : > { %p2503_p4 = pnand %p2502_p2, %p2754_p3  ;;  %p2509_p7 = scmp.lt.s32.totalorder %s2507_s21, %s2501_s26 }
 0xb5f   : > { %s2216_s12 = sshll.u32 %s3175_s27, 7  ;;  %s3180_s23 = sand.u32 1, %s3176_s19  }
 0xb60   : > { %s3179_s20 = smov %s3178_s0  ;;  %s3036_s18 = scalar_lea.hbm %s3178_s0, %s2216_s12 }
 0xb61   : > { %s1943_s13 = scalar_lea.sflag [#allocation4], %s3180_s23  ;;  %p2504_p5 = pneg %p2503_p4 }
 0xb62   : > { %p2510_p8 = por %p2509_p7, %p2508_p6 }
 0xb64   : > { %p2511_p10 = pnand %p2510_p8, %p2504_p5 }
 0xb66   : > { %2514 = shalt.err (!%p2511_p10)
}
 0xb67   : > { %s2515_s29 = scalar_lea.hbm %s3036_s18, 128  ;;  %s2519_s7 = scalar_lea.hbm %s3179_s20, 256 }
 0xb68   : > { %p2516_p11 = scmp.ne.s32.totalorder %s3036_s18, %s2515_s29  ;;  %p2520_p0 = scmp.lt.u32.totalorder %s3036_s18, %s3179_s20 }
 0xb69   : > { %p2521_p1 = scmp.lt.u32.totalorder %s2519_s7, %s2515_s29  ;;  %p2523_p4 = scmp.lt.u32.totalorder %s2515_s29, %s3036_s18 }
 0xb6a   : > { %p2517_p12 = pnand %p2516_p11, %p2754_p3 }
 0xb6b   : > { %p2522_p2 = por %p2521_p1, %p2520_p0 }
 0xb6c   : > { %p2518_p13 = pneg %p2517_p12 }
 0xb6d   : > { %p2524_p5 = por %p2523_p4, %p2522_p2 }
 0xb6f   : > { %p2525_p6 = pnand %p2524_p5, %p2518_p13 }
 0xb71   : > { %2528 = shalt.err (!%p2525_p6)
}
 0xb72   : > { %2385 = dma.vmem_to_hbm [thread:$0]  (%p2754_p3), %s1957_s25, 128, %s3036_s18, %s1943_s13  }
 0xb73 PF: > { %s3181_s16 = sld [smem:[#allocation13_spill]]  ;;  %s3182_s22 = sld [smem:[#allocation6_spill]] }
 0xb79   : > { %p2391_p7 = scmp.ge.s32.totalorder %s3181_s16, 2  ;;  %s1968_s27 = sand.u32 1, %s3182_s22  }
 0xb7a   : > { %s1969_s19 = scalar_lea.sflag [#allocation4], %s1968_s27 }
 0xb7b   : > { %p2388_p8 = pnand %p2391_p7, %p2764_p9 }
 0xb7d   : > { %2562 = dma.done.wait (!%p2388_p8), %s1969_s19, 128  }
 0xb7e   : > { %2564 = vsyncadd (!%p2388_p8), %s1969_s19, 4294967168  ;;  %s30_s30 = sadd.s32 1, %s3181_s16   ;;  %s3184_s24 = sld [smem:[#allocation7_spill]] }
 0xb7f   : > { %p27_p10 = scmp.ge.s32.totalorder %s30_s30, 6   ;;  %s3185_s25 = sld [smem:[#allocation8_spill]] }
 0xb80   : > { %s3186_s26 = sld [smem:[#allocation18_spill]]  ;;  %s3187_s27 = sld [smem:[#allocation11_spill]] }
 0xb81   : > { %s3188_s28 = sld [smem:[#allocation12_spill]]  ;;  %s3189_s29 = sld [smem:[#allocation14_spill]] }
 0xb82   : > { %s3190_s0 = sld [smem:[#allocation16_spill]]  ;;  %29 = sbr.rel (!%p27_p10) target bundleno = 18 (0x12), region = 173 }
 0xb89   :  { %1974 = vsyncpa [#allocation4], 1 }
 0xb8a   :  { %1976 = vsyncpa [#allocation4 + $0x1], 1 }

</bundles_post_ra>
